<compile_context>
chip_gen: v7x
topology: tpu7x:2x2x1
jax: 0.10.0
libtpu: 0.0.40
codegen_flags: <defaults>
</compile_context>

<pallas_src>
import numpy as np
import jax
import jax.numpy as jnp
from jax import lax
from jax.experimental import pallas as pl
from jax.experimental.pallas import tpu as pltpu

# ----------------------------- configuration --------------------------------
# Small-but-consistent config: the module hardcodes an input sequence length of 256
# (ponitconv1 in_channels = dim*2*256/patch_size), so SEQ_LEN must be 256.
DIM = 8            # embedding dim per branch  (PyTorch default: 16)
DEPTH = 2          # number of conv blocks     (PyTorch default: 8)
KSIZE = 9          # depthwise kernel size
PATCH = 8          # patch size / stride
SEQ_LEN = 256      # raw input length (hardcoded by the module's head)
BATCH = 2

C = 2 * DIM                    # channels inside conv blocks      (16)
NP = SEQ_LEN // PATCH          # sequence length after patchify   (32)
PAD = (KSIZE - 1) // 2         # 'same' padding for odd kernel    (4)
NPAD = NP + 2 * PAD            # padded sequence length           (40)
DIM2 = DIM // 2
BN_EPS = 1e-5
NCH = 6                        # folded per-channel constants per block

_SQRT1_2 = 0.7071067811865476


def _gelu(x):
    # exact (erf) GELU, matching PyTorch nn.GELU() default
    return 0.5 * x * (1.0 + lax.erf(x * _SQRT1_2))


# ------------------------------- fused kernel --------------------------------
def _fused_kernel(dp_ref, ip_ref, wd_ref, bd_ref, wi_ref, bi_ref,
                  dw_ref, pw_ref, ch_ref,
                  w1_ref, b1_ref, w2t_ref, b2_ref, w3_ref, b3_ref,
                  out_ref, xpad_ref):
    # --- patch embedding: Conv1d(1, DIM, k=PATCH, stride=PATCH) for decay & irf ---
    # contract over the PATCH axis directly (A @ B^T) -> absorbs the wrapper transpose
    dn = (((1,), (1,)), ((), ()))
    d = lax.dot_general(wd_ref[...], dp_ref[0], dn,
                        preferred_element_type=jnp.float32) + bd_ref[...]
    r = lax.dot_general(wi_ref[...], ip_ref[0], dn,
                        preferred_element_type=jnp.float32) + bi_ref[...]
    x = jnp.concatenate([d, r], axis=0)            # (C, NP) == torch.cat along channels

    # zero the padded scratch once; its borders stay zero across all blocks
    xpad_ref[...] = jnp.zeros((C, NPAD), jnp.float32)

    # --- conv blocks (depth unrolled; weights stacked along a leading depth axis) ---
    for blk in range(DEPTH):
        xpad_ref[:, PAD:PAD + NP] = x              # in-kernel 'same' padding
        acc = jnp.zeros((C, NP), jnp.float32) + ch_ref[blk, 0]   # depthwise bias
        for k in range(KSIZE):                     # depthwise conv (groups = C)
            acc = acc + xpad_ref[:, k:k + NP] * dw_ref[blk, k]
        h = _gelu(acc)
        h = h * ch_ref[blk, 1] + ch_ref[blk, 2]    # folded BatchNorm1d (inference)
        y = x + h                                  # residual
        z = jnp.dot(pw_ref[blk], y,
                    preferred_element_type=jnp.float32) + ch_ref[blk, 3]   # 1x1 conv
        z = _gelu(z)
        x = z * ch_ref[blk, 4] + ch_ref[blk, 5]    # folded BatchNorm1d (inference)

    # --- head: flatten + three 1x1 convs (no activation between them) ---
    prod = w1_ref[...] * x[None, :, :]                                       # (DIM, C, NP)
    h1 = jnp.sum(jnp.sum(prod, axis=2), axis=1, keepdims=True) + b1_ref[...]  # (DIM, 1)
    h2 = jnp.sum(w2t_ref[...] * h1, axis=0, keepdims=True) + b2_ref[...]      # (1, DIM2)
    h3 = jnp.sum(w3_ref[...] * h2, axis=1, keepdims=True) + b3_ref[...]       # (1, 1)
    out_ref[0] = h3


# ------------------------------ model forward --------------------------------
def forward(decay, irf, params):
    B = decay.shape[0]
    wd, bd, wi, bi = params["embed"]
    dw_all, pw_all, ch_all = params["blocks"]
    w1, b1, w2t, b2, w3, b3 = params["head"]

    # patchify is a free row-major reshape; the PATCH contraction happens in-kernel
    dpatch = decay.reshape(B, NP, PATCH)
    ipatch = irf.reshape(B, NP, PATCH)

    out = pl.pallas_call(
        _fused_kernel,
        out_shape=jax.ShapeDtypeStruct((B, 1, 1), jnp.float32),
        grid=(B,),
        in_specs=[
            pl.BlockSpec((1, NP, PATCH), lambda b: (b, 0, 0)),          # decay patches
            pl.BlockSpec((1, NP, PATCH), lambda b: (b, 0, 0)),          # irf patches
            pl.BlockSpec((DIM, PATCH), lambda b: (0, 0)),               # embed decay W
            pl.BlockSpec((DIM, 1), lambda b: (0, 0)),                   # embed decay b
            pl.BlockSpec((DIM, PATCH), lambda b: (0, 0)),               # embed irf W
            pl.BlockSpec((DIM, 1), lambda b: (0, 0)),                   # embed irf b
            pl.BlockSpec((DEPTH, KSIZE, C, 1), lambda b: (0, 0, 0, 0)),  # depthwise W
            pl.BlockSpec((DEPTH, C, C), lambda b: (0, 0, 0)),           # pointwise W
            pl.BlockSpec((DEPTH, NCH, C, 1), lambda b: (0, 0, 0, 0)),   # folded consts
            pl.BlockSpec((DIM, C, NP), lambda b: (0, 0, 0)),            # head W1
            pl.BlockSpec((DIM, 1), lambda b: (0, 0)),                   # head b1
            pl.BlockSpec((DIM, DIM2), lambda b: (0, 0)),                # head W2^T
            pl.BlockSpec((1, DIM2), lambda b: (0, 0)),                  # head b2
            pl.BlockSpec((1, DIM2), lambda b: (0, 0)),                  # head W3
            pl.BlockSpec((1, 1), lambda b: (0, 0)),                     # head b3
        ],
        out_specs=pl.BlockSpec((1, 1, 1), lambda b: (b, 0, 0)),
        scratch_shapes=[pltpu.VMEM((C, NPAD), jnp.float32)],
        compiler_params=pltpu.CompilerParams(dimension_semantics=("parallel",)),
    )(dpatch, ipatch, wd, bd, wi, bi, dw_all, pw_all, ch_all, w1, b1, w2t, b2, w3, b3)
    return out.reshape(-1)                          # == y.view(-1) in PyTorch


# ------------------------------ pure-JAX reference ---------------------------
def reference_forward(decay, irf, params):
    B = decay.shape[0]
    wd, bd, wi, bi = params["embed"]
    dw_all, pw_all, ch_all = params["blocks"]
    w1, b1, w2t, b2, w3, b3 = params["head"]

    dp = decay.reshape(B, NP, PATCH)
    ip = irf.reshape(B, NP, PATCH)
    d = jnp.einsum("dp,bnp->bdn", wd, dp) + bd[None]
    r = jnp.einsum("dp,bnp->bdn", wi, ip) + bi[None]
    y = jnp.concatenate([d, r], axis=1)                         # (B, C, NP)

    for blk in range(DEPTH):
        dw, pw, ch = dw_all[blk], pw_all[blk], ch_all[blk]
        xp = jnp.pad(y, ((0, 0), (0, 0), (PAD, PAD)))
        acc = jnp.zeros_like(y) + ch[0][None]
        for k in range(KSIZE):
            acc = acc + xp[:, :, k:k + NP] * dw[k][None]
        h = _gelu(acc) * ch[1][None] + ch[2][None]
        yr = y + h
        z = jnp.einsum("oc,bcn->bon", pw, yr) + ch[3][None]
        y = _gelu(z) * ch[4][None] + ch[5][None]

    h1 = jnp.einsum("dcn,bcn->bd", w1, y) + b1[:, 0][None]      # (B, DIM)
    h2 = h1 @ w2t + b2                                          # (B, DIM2)
    h3 = h2 @ w3.T + b3                                         # (B, 1)
    return h3.reshape(-1)


# ------------------------------ parameter init --------------------------------
def init_params(key):
    ks = iter(jax.random.split(key, 64))

    def nrm(shape, scale=0.1):
        return scale * jax.random.normal(next(ks), shape, jnp.float32)

    embed = (nrm((DIM, PATCH)), nrm((DIM, 1)), nrm((DIM, PATCH)), nrm((DIM, 1)))

    dw_list, pw_list, ch_list = [], [], []
    for _ in range(DEPTH):
        dw_list.append(nrm((KSIZE, C, 1)))
        pw_list.append(nrm((C, C)))
        dw_b = nrm((C, 1))
        g1 = 1.0 + nrm((C, 1)); bb1 = nrm((C, 1)); m1 = nrm((C, 1))
        v1 = 1.0 + 0.1 * jax.random.uniform(next(ks), (C, 1), jnp.float32)
        pw_b = nrm((C, 1))
        g2 = 1.0 + nrm((C, 1)); bb2 = nrm((C, 1)); m2 = nrm((C, 1))
        v2 = 1.0 + 0.1 * jax.random.uniform(next(ks), (C, 1), jnp.float32)
        # fold BatchNorm (inference) into scale/shift
        s1 = g1 * jax.lax.rsqrt(v1 + BN_EPS); t1 = bb1 - m1 * s1
        s2 = g2 * jax.lax.rsqrt(v2 + BN_EPS); t2 = bb2 - m2 * s2
        ch_list.append(jnp.stack([dw_b, s1, t1, pw_b, s2, t2], axis=0))   # (6, C, 1)

    blocks = (jnp.stack(dw_list),      # (DEPTH, KSIZE, C, 1)
              jnp.stack(pw_list),      # (DEPTH, C, C)
              jnp.stack(ch_list))      # (DEPTH, 6, C, 1)

    head = (
        nrm((DIM, C, NP)),   # ponitconv1 weight (DIM, C*NP, 1) reshaped to (DIM, C, NP)
        nrm((DIM, 1)),       # b1 (column)
        nrm((DIM, DIM2)),    # ponitconv2 weight, transposed  (W2^T)
        nrm((1, DIM2)),      # b2 (row)
        nrm((1, DIM2)),      # ponitconv3 weight (row)
        nrm((1, 1)),         # b3
    )
    return {"embed": embed, "blocks": blocks, "head": head}


# ----------------------------------- main -------------------------------------
if __name__ == "__main__":
    key = jax.random.PRNGKey(0)
    k_dec, k_irf, k_par = jax.random.split(key, 3)
    decay = jax.random.normal(k_dec, (BATCH, 1, SEQ_LEN), jnp.float32)
    irf = jax.random.normal(k_irf, (BATCH, 1, SEQ_LEN), jnp.float32)
    params = init_params(k_par)

    out = jax.block_until_ready(jax.jit(forward)(decay, irf, params))
    ref = jax.block_until_ready(reference_forward(decay, irf, params))

    assert out.shape == (BATCH,), f"unexpected output shape {out.shape}"
    if not np.allclose(np.asarray(out), np.asarray(ref), rtol=1e-4, atol=1e-4):
        raise AssertionError(f"mismatch: pallas={np.asarray(out)} ref={np.asarray(ref)}")

    print("KERNEL_OK")
</pallas_src>

<mosaic_0001>
module attributes {stable_mosaic.version = 11 : i64} {
  func.func @_fused_kernel(%arg0: i32, %arg1: memref<1x32x8xf32, #tpu.memory_space<vmem>>, %arg2: memref<1x32x8xf32, #tpu.memory_space<vmem>>, %arg3: memref<8x8xf32, #tpu.memory_space<vmem>>, %arg4: memref<8x1xf32, #tpu.memory_space<vmem>>, %arg5: memref<8x8xf32, #tpu.memory_space<vmem>>, %arg6: memref<8x1xf32, #tpu.memory_space<vmem>>, %arg7: memref<2x9x16x1xf32, #tpu.memory_space<vmem>>, %arg8: memref<2x16x16xf32, #tpu.memory_space<vmem>>, %arg9: memref<2x6x16x1xf32, #tpu.memory_space<vmem>>, %arg10: memref<8x16x32xf32, #tpu.memory_space<vmem>>, %arg11: memref<8x1xf32, #tpu.memory_space<vmem>>, %arg12: memref<8x4xf32, #tpu.memory_space<vmem>>, %arg13: memref<1x4xf32, #tpu.memory_space<vmem>>, %arg14: memref<1x4xf32, #tpu.memory_space<vmem>>, %arg15: memref<1x1xf32, #tpu.memory_space<vmem>>, %arg16: memref<1x1x1xf32, #tpu.memory_space<vmem>>, %arg17: memref<16x40xf32, #tpu.memory_space<vmem>>) attributes {dimension_semantics = [#tpu.dimension_semantics<parallel>], iteration_bounds = array<i64: 2>, scalar_prefetch = 0 : i64, scratch_operands = 1 : i64, tpu.core_type = #tpu.core_type<tc>, window_params = [{transform_indices = @transform_0, window_bounds = array<i64: 1, 32, 8>}, {transform_indices = @transform_1, window_bounds = array<i64: 1, 32, 8>}, {pipeline_mode = #tpu.pipeline_mode<synchronous>, transform_indices = @transform_2, window_bounds = array<i64: 8, 8>}, {pipeline_mode = #tpu.pipeline_mode<synchronous>, transform_indices = @transform_3, window_bounds = array<i64: 8, 1>}, {pipeline_mode = #tpu.pipeline_mode<synchronous>, transform_indices = @transform_4, window_bounds = array<i64: 8, 8>}, {pipeline_mode = #tpu.pipeline_mode<synchronous>, transform_indices = @transform_5, window_bounds = array<i64: 8, 1>}, {pipeline_mode = #tpu.pipeline_mode<synchronous>, transform_indices = @transform_6, window_bounds = array<i64: 2, 9, 16, 1>}, {pipeline_mode = #tpu.pipeline_mode<synchronous>, transform_indices = @transform_7, window_bounds = array<i64: 2, 16, 16>}, {pipeline_mode = #tpu.pipeline_mode<synchronous>, transform_indices = @transform_8, window_bounds = array<i64: 2, 6, 16, 1>}, {pipeline_mode = #tpu.pipeline_mode<synchronous>, transform_indices = @transform_9, window_bounds = array<i64: 8, 16, 32>}, {pipeline_mode = #tpu.pipeline_mode<synchronous>, transform_indices = @transform_10, window_bounds = array<i64: 8, 1>}, {pipeline_mode = #tpu.pipeline_mode<synchronous>, transform_indices = @transform_11, window_bounds = array<i64: 8, 4>}, {pipeline_mode = #tpu.pipeline_mode<synchronous>, transform_indices = @transform_12, window_bounds = array<i64: 1, 4>}, {pipeline_mode = #tpu.pipeline_mode<synchronous>, transform_indices = @transform_13, window_bounds = array<i64: 1, 4>}, {pipeline_mode = #tpu.pipeline_mode<synchronous>, transform_indices = @transform_14, window_bounds = array<i64: 1, 1>}, {transform_indices = @transform_15, window_bounds = array<i64: 1, 1, 1>}]} {
    %c0 = arith.constant 0 : index
    %c0_0 = arith.constant 0 : index
    %0 = vector.load %arg3[%c0, %c0_0] : memref<8x8xf32, #tpu.memory_space<vmem>>, vector<8x8xf32>
    %c0_1 = arith.constant 0 : index
    %c0_2 = arith.constant 0 : index
    %c0_3 = arith.constant 0 : index
    %1 = vector.load %arg1[%c0_1, %c0_2, %c0_3] : memref<1x32x8xf32, #tpu.memory_space<vmem>>, vector<1x32x8xf32>
    %2 = vector.shape_cast %1 : vector<1x32x8xf32> to vector<32x8xf32>
    %cst = arith.constant dense<0.000000e+00> : vector<8x32xf32>
    %3 = tpu.matmul %0, %2, %cst {dimension_numbers = #tpu.dot_dimension_numbers<[1], [1], [0], [0], [0, 0, 1, 0], [], []>} : vector<8x8xf32>, vector<32x8xf32>, vector<8x32xf32> -> vector<8x32xf32>
    %c0_4 = arith.constant 0 : index
    %c0_5 = arith.constant 0 : index
    %4 = vector.load %arg4[%c0_4, %c0_5] : memref<8x1xf32, #tpu.memory_space<vmem>>, vector<8x1xf32>
    %5 = vector.broadcast %4 : vector<8x1xf32> to vector<8x32xf32>
    %6 = arith.addf %3, %5 : vector<8x32xf32>
    %c0_6 = arith.constant 0 : index
    %c0_7 = arith.constant 0 : index
    %7 = vector.load %arg5[%c0_6, %c0_7] : memref<8x8xf32, #tpu.memory_space<vmem>>, vector<8x8xf32>
    %c0_8 = arith.constant 0 : index
    %c0_9 = arith.constant 0 : index
    %c0_10 = arith.constant 0 : index
    %8 = vector.load %arg2[%c0_8, %c0_9, %c0_10] : memref<1x32x8xf32, #tpu.memory_space<vmem>>, vector<1x32x8xf32>
    %9 = vector.shape_cast %8 : vector<1x32x8xf32> to vector<32x8xf32>
    %cst_11 = arith.constant dense<0.000000e+00> : vector<8x32xf32>
    %10 = tpu.matmul %7, %9, %cst_11 {dimension_numbers = #tpu.dot_dimension_numbers<[1], [1], [0], [0], [0, 0, 1, 0], [], []>} : vector<8x8xf32>, vector<32x8xf32>, vector<8x32xf32> -> vector<8x32xf32>
    %c0_12 = arith.constant 0 : index
    %c0_13 = arith.constant 0 : index
    %11 = vector.load %arg6[%c0_12, %c0_13] : memref<8x1xf32, #tpu.memory_space<vmem>>, vector<8x1xf32>
    %12 = vector.broadcast %11 : vector<8x1xf32> to vector<8x32xf32>
    %13 = arith.addf %10, %12 : vector<8x32xf32>
    %14 = tpu.concatenate %6, %13 in 0 : vector<8x32xf32>, vector<8x32xf32> -> vector<16x32xf32>
    %cst_14 = arith.constant 0.000000e+00 : f32
    %15 = vector.broadcast %cst_14 : f32 to vector<16x40xf32>
    %c0_15 = arith.constant 0 : index
    %c0_16 = arith.constant 0 : index
    %16 = vector.load %arg17[%c0_15, %c0_16] : memref<16x40xf32, #tpu.memory_space<vmem>>, vector<16x40xf32>
    tpu.vector_store %arg17[%c0_15, %c0_16], %15 {strides = array<i32>} : memref<16x40xf32, #tpu.memory_space<vmem>>, vector<16x40xf32>,
    %c0_17 = arith.constant 0 : index
    %c4 = arith.constant 4 : index
    %17 = vector.load %arg17[%c0_17, %c4] : memref<16x40xf32, #tpu.memory_space<vmem>>, vector<16x32xf32>
    tpu.vector_store %arg17[%c0_17, %c4], %14 {strides = array<i32>} : memref<16x40xf32, #tpu.memory_space<vmem>>, vector<16x32xf32>,
    %cst_18 = arith.constant 0.000000e+00 : f32
    %18 = vector.broadcast %cst_18 : f32 to vector<16x32xf32>
    %c0_19 = arith.constant 0 : index
    %c0_20 = arith.constant 0 : index
    %c0_21 = arith.constant 0 : index
    %c0_22 = arith.constant 0 : index
    %19 = vector.load %arg9[%c0_19, %c0_20, %c0_21, %c0_22] : memref<2x6x16x1xf32, #tpu.memory_space<vmem>>, vector<1x1x16x1xf32>
    %20 = vector.shape_cast %19 : vector<1x1x16x1xf32> to vector<16x1xf32>
    %21 = vector.broadcast %20 : vector<16x1xf32> to vector<16x32xf32>
    %22 = arith.addf %18, %21 : vector<16x32xf32>
    %c0_23 = arith.constant 0 : index
    %c0_24 = arith.constant 0 : index
    %23 = vector.load %arg17[%c0_23, %c0_24] : memref<16x40xf32, #tpu.memory_space<vmem>>, vector<16x32xf32>
    %c0_25 = arith.constant 0 : index
    %c0_26 = arith.constant 0 : index
    %c0_27 = arith.constant 0 : index
    %c0_28 = arith.constant 0 : index
    %24 = vector.load %arg7[%c0_25, %c0_26, %c0_27, %c0_28] : memref<2x9x16x1xf32, #tpu.memory_space<vmem>>, vector<1x1x16x1xf32>
    %25 = vector.shape_cast %24 : vector<1x1x16x1xf32> to vector<16x1xf32>
    %26 = vector.broadcast %25 : vector<16x1xf32> to vector<16x32xf32>
    %27 = arith.mulf %23, %26 : vector<16x32xf32>
    %28 = arith.addf %22, %27 : vector<16x32xf32>
    %c0_29 = arith.constant 0 : index
    %c1 = arith.constant 1 : index
    %29 = vector.load %arg17[%c0_29, %c1] : memref<16x40xf32, #tpu.memory_space<vmem>>, vector<16x32xf32>
    %c0_30 = arith.constant 0 : index
    %c1_31 = arith.constant 1 : index
    %c0_32 = arith.constant 0 : index
    %c0_33 = arith.constant 0 : index
    %30 = vector.load %arg7[%c0_30, %c1_31, %c0_32, %c0_33] : memref<2x9x16x1xf32, #tpu.memory_space<vmem>>, vector<1x1x16x1xf32>
    %31 = vector.shape_cast %30 : vector<1x1x16x1xf32> to vector<16x1xf32>
    %32 = vector.broadcast %31 : vector<16x1xf32> to vector<16x32xf32>
    %33 = arith.mulf %29, %32 : vector<16x32xf32>
    %34 = arith.addf %28, %33 : vector<16x32xf32>
    %c0_34 = arith.constant 0 : index
    %c2 = arith.constant 2 : index
    %35 = vector.load %arg17[%c0_34, %c2] : memref<16x40xf32, #tpu.memory_space<vmem>>, vector<16x32xf32>
    %c0_35 = arith.constant 0 : index
    %c2_36 = arith.constant 2 : index
    %c0_37 = arith.constant 0 : index
    %c0_38 = arith.constant 0 : index
    %36 = vector.load %arg7[%c0_35, %c2_36, %c0_37, %c0_38] : memref<2x9x16x1xf32, #tpu.memory_space<vmem>>, vector<1x1x16x1xf32>
    %37 = vector.shape_cast %36 : vector<1x1x16x1xf32> to vector<16x1xf32>
    %38 = vector.broadcast %37 : vector<16x1xf32> to vector<16x32xf32>
    %39 = arith.mulf %35, %38 : vector<16x32xf32>
    %40 = arith.addf %34, %39 : vector<16x32xf32>
    %c0_39 = arith.constant 0 : index
    %c3 = arith.constant 3 : index
    %41 = vector.load %arg17[%c0_39, %c3] : memref<16x40xf32, #tpu.memory_space<vmem>>, vector<16x32xf32>
    %c0_40 = arith.constant 0 : index
    %c3_41 = arith.constant 3 : index
    %c0_42 = arith.constant 0 : index
    %c0_43 = arith.constant 0 : index
    %42 = vector.load %arg7[%c0_40, %c3_41, %c0_42, %c0_43] : memref<2x9x16x1xf32, #tpu.memory_space<vmem>>, vector<1x1x16x1xf32>
    %43 = vector.shape_cast %42 : vector<1x1x16x1xf32> to vector<16x1xf32>
    %44 = vector.broadcast %43 : vector<16x1xf32> to vector<16x32xf32>
    %45 = arith.mulf %41, %44 : vector<16x32xf32>
    %46 = arith.addf %40, %45 : vector<16x32xf32>
    %c0_44 = arith.constant 0 : index
    %c4_45 = arith.constant 4 : index
    %47 = vector.load %arg17[%c0_44, %c4_45] : memref<16x40xf32, #tpu.memory_space<vmem>>, vector<16x32xf32>
    %c0_46 = arith.constant 0 : index
    %c4_47 = arith.constant 4 : index
    %c0_48 = arith.constant 0 : index
    %c0_49 = arith.constant 0 : index
    %48 = vector.load %arg7[%c0_46, %c4_47, %c0_48, %c0_49] : memref<2x9x16x1xf32, #tpu.memory_space<vmem>>, vector<1x1x16x1xf32>
    %49 = vector.shape_cast %48 : vector<1x1x16x1xf32> to vector<16x1xf32>
    %50 = vector.broadcast %49 : vector<16x1xf32> to vector<16x32xf32>
    %51 = arith.mulf %47, %50 : vector<16x32xf32>
    %52 = arith.addf %46, %51 : vector<16x32xf32>
    %c0_50 = arith.constant 0 : index
    %c5 = arith.constant 5 : index
    %53 = vector.load %arg17[%c0_50, %c5] : memref<16x40xf32, #tpu.memory_space<vmem>>, vector<16x32xf32>
    %c0_51 = arith.constant 0 : index
    %c5_52 = arith.constant 5 : index
    %c0_53 = arith.constant 0 : index
    %c0_54 = arith.constant 0 : index
    %54 = vector.load %arg7[%c0_51, %c5_52, %c0_53, %c0_54] : memref<2x9x16x1xf32, #tpu.memory_space<vmem>>, vector<1x1x16x1xf32>
    %55 = vector.shape_cast %54 : vector<1x1x16x1xf32> to vector<16x1xf32>
    %56 = vector.broadcast %55 : vector<16x1xf32> to vector<16x32xf32>
    %57 = arith.mulf %53, %56 : vector<16x32xf32>
    %58 = arith.addf %52, %57 : vector<16x32xf32>
    %c0_55 = arith.constant 0 : index
    %c6 = arith.constant 6 : index
    %59 = vector.load %arg17[%c0_55, %c6] : memref<16x40xf32, #tpu.memory_space<vmem>>, vector<16x32xf32>
    %c0_56 = arith.constant 0 : index
    %c6_57 = arith.constant 6 : index
    %c0_58 = arith.constant 0 : index
    %c0_59 = arith.constant 0 : index
    %60 = vector.load %arg7[%c0_56, %c6_57, %c0_58, %c0_59] : memref<2x9x16x1xf32, #tpu.memory_space<vmem>>, vector<1x1x16x1xf32>
    %61 = vector.shape_cast %60 : vector<1x1x16x1xf32> to vector<16x1xf32>
    %62 = vector.broadcast %61 : vector<16x1xf32> to vector<16x32xf32>
    %63 = arith.mulf %59, %62 : vector<16x32xf32>
    %64 = arith.addf %58, %63 : vector<16x32xf32>
    %c0_60 = arith.constant 0 : index
    %c7 = arith.constant 7 : index
    %65 = vector.load %arg17[%c0_60, %c7] : memref<16x40xf32, #tpu.memory_space<vmem>>, vector<16x32xf32>
    %c0_61 = arith.constant 0 : index
    %c7_62 = arith.constant 7 : index
    %c0_63 = arith.constant 0 : index
    %c0_64 = arith.constant 0 : index
    %66 = vector.load %arg7[%c0_61, %c7_62, %c0_63, %c0_64] : memref<2x9x16x1xf32, #tpu.memory_space<vmem>>, vector<1x1x16x1xf32>
    %67 = vector.shape_cast %66 : vector<1x1x16x1xf32> to vector<16x1xf32>
    %68 = vector.broadcast %67 : vector<16x1xf32> to vector<16x32xf32>
    %69 = arith.mulf %65, %68 : vector<16x32xf32>
    %70 = arith.addf %64, %69 : vector<16x32xf32>
    %c0_65 = arith.constant 0 : index
    %c8 = arith.constant 8 : index
    %71 = vector.load %arg17[%c0_65, %c8] : memref<16x40xf32, #tpu.memory_space<vmem>>, vector<16x32xf32>
    %c0_66 = arith.constant 0 : index
    %c8_67 = arith.constant 8 : index
    %c0_68 = arith.constant 0 : index
    %c0_69 = arith.constant 0 : index
    %72 = vector.load %arg7[%c0_66, %c8_67, %c0_68, %c0_69] : memref<2x9x16x1xf32, #tpu.memory_space<vmem>>, vector<1x1x16x1xf32>
    %73 = vector.shape_cast %72 : vector<1x1x16x1xf32> to vector<16x1xf32>
    %74 = vector.broadcast %73 : vector<16x1xf32> to vector<16x32xf32>
    %75 = arith.mulf %71, %74 : vector<16x32xf32>
    %76 = arith.addf %70, %75 : vector<16x32xf32>
    %cst_70 = arith.constant 5.000000e-01 : f32
    %77 = vector.broadcast %cst_70 : f32 to vector<16x32xf32>
    %78 = arith.mulf %77, %76 : vector<16x32xf32>
    %cst_71 = arith.constant 0.707106769 : f32
    %79 = vector.broadcast %cst_71 : f32 to vector<16x32xf32>
    %80 = arith.mulf %76, %79 : vector<16x32xf32>
    %81 = math.erf %80 : vector<16x32xf32>
    %cst_72 = arith.constant 1.000000e+00 : f32
    %82 = vector.broadcast %cst_72 : f32 to vector<16x32xf32>
    %83 = arith.addf %82, %81 : vector<16x32xf32>
    %84 = arith.mulf %78, %83 : vector<16x32xf32>
    %c0_73 = arith.constant 0 : index
    %c1_74 = arith.constant 1 : index
    %c0_75 = arith.constant 0 : index
    %c0_76 = arith.constant 0 : index
    %85 = vector.load %arg9[%c0_73, %c1_74, %c0_75, %c0_76] : memref<2x6x16x1xf32, #tpu.memory_space<vmem>>, vector<1x1x16x1xf32>
    %86 = vector.shape_cast %85 : vector<1x1x16x1xf32> to vector<16x1xf32>
    %87 = vector.broadcast %86 : vector<16x1xf32> to vector<16x32xf32>
    %88 = arith.mulf %84, %87 : vector<16x32xf32>
    %c0_77 = arith.constant 0 : index
    %c2_78 = arith.constant 2 : index
    %c0_79 = arith.constant 0 : index
    %c0_80 = arith.constant 0 : index
    %89 = vector.load %arg9[%c0_77, %c2_78, %c0_79, %c0_80] : memref<2x6x16x1xf32, #tpu.memory_space<vmem>>, vector<1x1x16x1xf32>
    %90 = vector.shape_cast %89 : vector<1x1x16x1xf32> to vector<16x1xf32>
    %91 = vector.broadcast %90 : vector<16x1xf32> to vector<16x32xf32>
    %92 = arith.addf %88, %91 : vector<16x32xf32>
    %93 = arith.addf %14, %92 : vector<16x32xf32>
    %c0_81 = arith.constant 0 : index
    %c0_82 = arith.constant 0 : index
    %c0_83 = arith.constant 0 : index
    %94 = vector.load %arg8[%c0_81, %c0_82, %c0_83] : memref<2x16x16xf32, #tpu.memory_space<vmem>>, vector<1x16x16xf32>
    %95 = vector.shape_cast %94 : vector<1x16x16xf32> to vector<16x16xf32>
    %cst_84 = arith.constant dense<0.000000e+00> : vector<16x32xf32>
    %96 = tpu.matmul %95, %93, %cst_84 {dimension_numbers = #tpu.dot_dimension_numbers<[1], [0], [0], [1], [0, 0, 1, 1], [], []>} : vector<16x16xf32>, vector<16x32xf32>, vector<16x32xf32> -> vector<16x32xf32>
    %c0_85 = arith.constant 0 : index
    %c3_86 = arith.constant 3 : index
    %c0_87 = arith.constant 0 : index
    %c0_88 = arith.constant 0 : index
    %97 = vector.load %arg9[%c0_85, %c3_86, %c0_87, %c0_88] : memref<2x6x16x1xf32, #tpu.memory_space<vmem>>, vector<1x1x16x1xf32>
    %98 = vector.shape_cast %97 : vector<1x1x16x1xf32> to vector<16x1xf32>
    %99 = vector.broadcast %98 : vector<16x1xf32> to vector<16x32xf32>
    %100 = arith.addf %96, %99 : vector<16x32xf32>
    %cst_89 = arith.constant 5.000000e-01 : f32
    %101 = vector.broadcast %cst_89 : f32 to vector<16x32xf32>
    %102 = arith.mulf %101, %100 : vector<16x32xf32>
    %cst_90 = arith.constant 0.707106769 : f32
    %103 = vector.broadcast %cst_90 : f32 to vector<16x32xf32>
    %104 = arith.mulf %100, %103 : vector<16x32xf32>
    %105 = math.erf %104 : vector<16x32xf32>
    %cst_91 = arith.constant 1.000000e+00 : f32
    %106 = vector.broadcast %cst_91 : f32 to vector<16x32xf32>
    %107 = arith.addf %106, %105 : vector<16x32xf32>
    %108 = arith.mulf %102, %107 : vector<16x32xf32>
    %c0_92 = arith.constant 0 : index
    %c4_93 = arith.constant 4 : index
    %c0_94 = arith.constant 0 : index
    %c0_95 = arith.constant 0 : index
    %109 = vector.load %arg9[%c0_92, %c4_93, %c0_94, %c0_95] : memref<2x6x16x1xf32, #tpu.memory_space<vmem>>, vector<1x1x16x1xf32>
    %110 = vector.shape_cast %109 : vector<1x1x16x1xf32> to vector<16x1xf32>
    %111 = vector.broadcast %110 : vector<16x1xf32> to vector<16x32xf32>
    %112 = arith.mulf %108, %111 : vector<16x32xf32>
    %c0_96 = arith.constant 0 : index
    %c5_97 = arith.constant 5 : index
    %c0_98 = arith.constant 0 : index
    %c0_99 = arith.constant 0 : index
    %113 = vector.load %arg9[%c0_96, %c5_97, %c0_98, %c0_99] : memref<2x6x16x1xf32, #tpu.memory_space<vmem>>, vector<1x1x16x1xf32>
    %114 = vector.shape_cast %113 : vector<1x1x16x1xf32> to vector<16x1xf32>
    %115 = vector.broadcast %114 : vector<16x1xf32> to vector<16x32xf32>
    %116 = arith.addf %112, %115 : vector<16x32xf32>
    %c0_100 = arith.constant 0 : index
    %c4_101 = arith.constant 4 : index
    %117 = vector.load %arg17[%c0_100, %c4_101] : memref<16x40xf32, #tpu.memory_space<vmem>>, vector<16x32xf32>
    tpu.vector_store %arg17[%c0_100, %c4_101], %116 {strides = array<i32>} : memref<16x40xf32, #tpu.memory_space<vmem>>, vector<16x32xf32>,
    %cst_102 = arith.constant 0.000000e+00 : f32
    %118 = vector.broadcast %cst_102 : f32 to vector<16x32xf32>
    %c1_103 = arith.constant 1 : index
    %c0_104 = arith.constant 0 : index
    %c0_105 = arith.constant 0 : index
    %c0_106 = arith.constant 0 : index
    %119 = vector.load %arg9[%c1_103, %c0_104, %c0_105, %c0_106] : memref<2x6x16x1xf32, #tpu.memory_space<vmem>>, vector<1x1x16x1xf32>
    %120 = vector.shape_cast %119 : vector<1x1x16x1xf32> to vector<16x1xf32>
    %121 = vector.broadcast %120 : vector<16x1xf32> to vector<16x32xf32>
    %122 = arith.addf %118, %121 : vector<16x32xf32>
    %c0_107 = arith.constant 0 : index
    %c0_108 = arith.constant 0 : index
    %123 = vector.load %arg17[%c0_107, %c0_108] : memref<16x40xf32, #tpu.memory_space<vmem>>, vector<16x32xf32>
    %c1_109 = arith.constant 1 : index
    %c0_110 = arith.constant 0 : index
    %c0_111 = arith.constant 0 : index
    %c0_112 = arith.constant 0 : index
    %124 = vector.load %arg7[%c1_109, %c0_110, %c0_111, %c0_112] : memref<2x9x16x1xf32, #tpu.memory_space<vmem>>, vector<1x1x16x1xf32>
    %125 = vector.shape_cast %124 : vector<1x1x16x1xf32> to vector<16x1xf32>
    %126 = vector.broadcast %125 : vector<16x1xf32> to vector<16x32xf32>
    %127 = arith.mulf %123, %126 : vector<16x32xf32>
    %128 = arith.addf %122, %127 : vector<16x32xf32>
    %c0_113 = arith.constant 0 : index
    %c1_114 = arith.constant 1 : index
    %129 = vector.load %arg17[%c0_113, %c1_114] : memref<16x40xf32, #tpu.memory_space<vmem>>, vector<16x32xf32>
    %c1_115 = arith.constant 1 : index
    %c1_116 = arith.constant 1 : index
    %c0_117 = arith.constant 0 : index
    %c0_118 = arith.constant 0 : index
    %130 = vector.load %arg7[%c1_115, %c1_116, %c0_117, %c0_118] : memref<2x9x16x1xf32, #tpu.memory_space<vmem>>, vector<1x1x16x1xf32>
    %131 = vector.shape_cast %130 : vector<1x1x16x1xf32> to vector<16x1xf32>
    %132 = vector.broadcast %131 : vector<16x1xf32> to vector<16x32xf32>
    %133 = arith.mulf %129, %132 : vector<16x32xf32>
    %134 = arith.addf %128, %133 : vector<16x32xf32>
    %c0_119 = arith.constant 0 : index
    %c2_120 = arith.constant 2 : index
    %135 = vector.load %arg17[%c0_119, %c2_120] : memref<16x40xf32, #tpu.memory_space<vmem>>, vector<16x32xf32>
    %c1_121 = arith.constant 1 : index
    %c2_122 = arith.constant 2 : index
    %c0_123 = arith.constant 0 : index
    %c0_124 = arith.constant 0 : index
    %136 = vector.load %arg7[%c1_121, %c2_122, %c0_123, %c0_124] : memref<2x9x16x1xf32, #tpu.memory_space<vmem>>, vector<1x1x16x1xf32>
    %137 = vector.shape_cast %136 : vector<1x1x16x1xf32> to vector<16x1xf32>
    %138 = vector.broadcast %137 : vector<16x1xf32> to vector<16x32xf32>
    %139 = arith.mulf %135, %138 : vector<16x32xf32>
    %140 = arith.addf %134, %139 : vector<16x32xf32>
    %c0_125 = arith.constant 0 : index
    %c3_126 = arith.constant 3 : index
    %141 = vector.load %arg17[%c0_125, %c3_126] : memref<16x40xf32, #tpu.memory_space<vmem>>, vector<16x32xf32>
    %c1_127 = arith.constant 1 : index
    %c3_128 = arith.constant 3 : index
    %c0_129 = arith.constant 0 : index
    %c0_130 = arith.constant 0 : index
    %142 = vector.load %arg7[%c1_127, %c3_128, %c0_129, %c0_130] : memref<2x9x16x1xf32, #tpu.memory_space<vmem>>, vector<1x1x16x1xf32>
    %143 = vector.shape_cast %142 : vector<1x1x16x1xf32> to vector<16x1xf32>
    %144 = vector.broadcast %143 : vector<16x1xf32> to vector<16x32xf32>
    %145 = arith.mulf %141, %144 : vector<16x32xf32>
    %146 = arith.addf %140, %145 : vector<16x32xf32>
    %c0_131 = arith.constant 0 : index
    %c4_132 = arith.constant 4 : index
    %147 = vector.load %arg17[%c0_131, %c4_132] : memref<16x40xf32, #tpu.memory_space<vmem>>, vector<16x32xf32>
    %c1_133 = arith.constant 1 : index
    %c4_134 = arith.constant 4 : index
    %c0_135 = arith.constant 0 : index
    %c0_136 = arith.constant 0 : index
    %148 = vector.load %arg7[%c1_133, %c4_134, %c0_135, %c0_136] : memref<2x9x16x1xf32, #tpu.memory_space<vmem>>, vector<1x1x16x1xf32>
    %149 = vector.shape_cast %148 : vector<1x1x16x1xf32> to vector<16x1xf32>
    %150 = vector.broadcast %149 : vector<16x1xf32> to vector<16x32xf32>
    %151 = arith.mulf %147, %150 : vector<16x32xf32>
    %152 = arith.addf %146, %151 : vector<16x32xf32>
    %c0_137 = arith.constant 0 : index
    %c5_138 = arith.constant 5 : index
    %153 = vector.load %arg17[%c0_137, %c5_138] : memref<16x40xf32, #tpu.memory_space<vmem>>, vector<16x32xf32>
    %c1_139 = arith.constant 1 : index
    %c5_140 = arith.constant 5 : index
    %c0_141 = arith.constant 0 : index
    %c0_142 = arith.constant 0 : index
    %154 = vector.load %arg7[%c1_139, %c5_140, %c0_141, %c0_142] : memref<2x9x16x1xf32, #tpu.memory_space<vmem>>, vector<1x1x16x1xf32>
    %155 = vector.shape_cast %154 : vector<1x1x16x1xf32> to vector<16x1xf32>
    %156 = vector.broadcast %155 : vector<16x1xf32> to vector<16x32xf32>
    %157 = arith.mulf %153, %156 : vector<16x32xf32>
    %158 = arith.addf %152, %157 : vector<16x32xf32>
    %c0_143 = arith.constant 0 : index
    %c6_144 = arith.constant 6 : index
    %159 = vector.load %arg17[%c0_143, %c6_144] : memref<16x40xf32, #tpu.memory_space<vmem>>, vector<16x32xf32>
    %c1_145 = arith.constant 1 : index
    %c6_146 = arith.constant 6 : index
    %c0_147 = arith.constant 0 : index
    %c0_148 = arith.constant 0 : index
    %160 = vector.load %arg7[%c1_145, %c6_146, %c0_147, %c0_148] : memref<2x9x16x1xf32, #tpu.memory_space<vmem>>, vector<1x1x16x1xf32>
    %161 = vector.shape_cast %160 : vector<1x1x16x1xf32> to vector<16x1xf32>
    %162 = vector.broadcast %161 : vector<16x1xf32> to vector<16x32xf32>
    %163 = arith.mulf %159, %162 : vector<16x32xf32>
    %164 = arith.addf %158, %163 : vector<16x32xf32>
    %c0_149 = arith.constant 0 : index
    %c7_150 = arith.constant 7 : index
    %165 = vector.load %arg17[%c0_149, %c7_150] : memref<16x40xf32, #tpu.memory_space<vmem>>, vector<16x32xf32>
    %c1_151 = arith.constant 1 : index
    %c7_152 = arith.constant 7 : index
    %c0_153 = arith.constant 0 : index
    %c0_154 = arith.constant 0 : index
    %166 = vector.load %arg7[%c1_151, %c7_152, %c0_153, %c0_154] : memref<2x9x16x1xf32, #tpu.memory_space<vmem>>, vector<1x1x16x1xf32>
    %167 = vector.shape_cast %166 : vector<1x1x16x1xf32> to vector<16x1xf32>
    %168 = vector.broadcast %167 : vector<16x1xf32> to vector<16x32xf32>
    %169 = arith.mulf %165, %168 : vector<16x32xf32>
    %170 = arith.addf %164, %169 : vector<16x32xf32>
    %c0_155 = arith.constant 0 : index
    %c8_156 = arith.constant 8 : index
    %171 = vector.load %arg17[%c0_155, %c8_156] : memref<16x40xf32, #tpu.memory_space<vmem>>, vector<16x32xf32>
    %c1_157 = arith.constant 1 : index
    %c8_158 = arith.constant 8 : index
    %c0_159 = arith.constant 0 : index
    %c0_160 = arith.constant 0 : index
    %172 = vector.load %arg7[%c1_157, %c8_158, %c0_159, %c0_160] : memref<2x9x16x1xf32, #tpu.memory_space<vmem>>, vector<1x1x16x1xf32>
    %173 = vector.shape_cast %172 : vector<1x1x16x1xf32> to vector<16x1xf32>
    %174 = vector.broadcast %173 : vector<16x1xf32> to vector<16x32xf32>
    %175 = arith.mulf %171, %174 : vector<16x32xf32>
    %176 = arith.addf %170, %175 : vector<16x32xf32>
    %cst_161 = arith.constant 5.000000e-01 : f32
    %177 = vector.broadcast %cst_161 : f32 to vector<16x32xf32>
    %178 = arith.mulf %177, %176 : vector<16x32xf32>
    %cst_162 = arith.constant 0.707106769 : f32
    %179 = vector.broadcast %cst_162 : f32 to vector<16x32xf32>
    %180 = arith.mulf %176, %179 : vector<16x32xf32>
    %181 = math.erf %180 : vector<16x32xf32>
    %cst_163 = arith.constant 1.000000e+00 : f32
    %182 = vector.broadcast %cst_163 : f32 to vector<16x32xf32>
    %183 = arith.addf %182, %181 : vector<16x32xf32>
    %184 = arith.mulf %178, %183 : vector<16x32xf32>
    %c1_164 = arith.constant 1 : index
    %c1_165 = arith.constant 1 : index
    %c0_166 = arith.constant 0 : index
    %c0_167 = arith.constant 0 : index
    %185 = vector.load %arg9[%c1_164, %c1_165, %c0_166, %c0_167] : memref<2x6x16x1xf32, #tpu.memory_space<vmem>>, vector<1x1x16x1xf32>
    %186 = vector.shape_cast %185 : vector<1x1x16x1xf32> to vector<16x1xf32>
    %187 = vector.broadcast %186 : vector<16x1xf32> to vector<16x32xf32>
    %188 = arith.mulf %184, %187 : vector<16x32xf32>
    %c1_168 = arith.constant 1 : index
    %c2_169 = arith.constant 2 : index
    %c0_170 = arith.constant 0 : index
    %c0_171 = arith.constant 0 : index
    %189 = vector.load %arg9[%c1_168, %c2_169, %c0_170, %c0_171] : memref<2x6x16x1xf32, #tpu.memory_space<vmem>>, vector<1x1x16x1xf32>
    %190 = vector.shape_cast %189 : vector<1x1x16x1xf32> to vector<16x1xf32>
    %191 = vector.broadcast %190 : vector<16x1xf32> to vector<16x32xf32>
    %192 = arith.addf %188, %191 : vector<16x32xf32>
    %193 = arith.addf %116, %192 : vector<16x32xf32>
    %c1_172 = arith.constant 1 : index
    %c0_173 = arith.constant 0 : index
    %c0_174 = arith.constant 0 : index
    %194 = vector.load %arg8[%c1_172, %c0_173, %c0_174] : memref<2x16x16xf32, #tpu.memory_space<vmem>>, vector<1x16x16xf32>
    %195 = vector.shape_cast %194 : vector<1x16x16xf32> to vector<16x16xf32>
    %cst_175 = arith.constant dense<0.000000e+00> : vector<16x32xf32>
    %196 = tpu.matmul %195, %193, %cst_175 {dimension_numbers = #tpu.dot_dimension_numbers<[1], [0], [0], [1], [0, 0, 1, 1], [], []>} : vector<16x16xf32>, vector<16x32xf32>, vector<16x32xf32> -> vector<16x32xf32>
    %c1_176 = arith.constant 1 : index
    %c3_177 = arith.constant 3 : index
    %c0_178 = arith.constant 0 : index
    %c0_179 = arith.constant 0 : index
    %197 = vector.load %arg9[%c1_176, %c3_177, %c0_178, %c0_179] : memref<2x6x16x1xf32, #tpu.memory_space<vmem>>, vector<1x1x16x1xf32>
    %198 = vector.shape_cast %197 : vector<1x1x16x1xf32> to vector<16x1xf32>
    %199 = vector.broadcast %198 : vector<16x1xf32> to vector<16x32xf32>
    %200 = arith.addf %196, %199 : vector<16x32xf32>
    %cst_180 = arith.constant 5.000000e-01 : f32
    %201 = vector.broadcast %cst_180 : f32 to vector<16x32xf32>
    %202 = arith.mulf %201, %200 : vector<16x32xf32>
    %cst_181 = arith.constant 0.707106769 : f32
    %203 = vector.broadcast %cst_181 : f32 to vector<16x32xf32>
    %204 = arith.mulf %200, %203 : vector<16x32xf32>
    %205 = math.erf %204 : vector<16x32xf32>
    %cst_182 = arith.constant 1.000000e+00 : f32
    %206 = vector.broadcast %cst_182 : f32 to vector<16x32xf32>
    %207 = arith.addf %206, %205 : vector<16x32xf32>
    %208 = arith.mulf %202, %207 : vector<16x32xf32>
    %c1_183 = arith.constant 1 : index
    %c4_184 = arith.constant 4 : index
    %c0_185 = arith.constant 0 : index
    %c0_186 = arith.constant 0 : index
    %209 = vector.load %arg9[%c1_183, %c4_184, %c0_185, %c0_186] : memref<2x6x16x1xf32, #tpu.memory_space<vmem>>, vector<1x1x16x1xf32>
    %210 = vector.shape_cast %209 : vector<1x1x16x1xf32> to vector<16x1xf32>
    %211 = vector.broadcast %210 : vector<16x1xf32> to vector<16x32xf32>
    %212 = arith.mulf %208, %211 : vector<16x32xf32>
    %c1_187 = arith.constant 1 : index
    %c5_188 = arith.constant 5 : index
    %c0_189 = arith.constant 0 : index
    %c0_190 = arith.constant 0 : index
    %213 = vector.load %arg9[%c1_187, %c5_188, %c0_189, %c0_190] : memref<2x6x16x1xf32, #tpu.memory_space<vmem>>, vector<1x1x16x1xf32>
    %214 = vector.shape_cast %213 : vector<1x1x16x1xf32> to vector<16x1xf32>
    %215 = vector.broadcast %214 : vector<16x1xf32> to vector<16x32xf32>
    %216 = arith.addf %212, %215 : vector<16x32xf32>
    %c0_191 = arith.constant 0 : index
    %c0_192 = arith.constant 0 : index
    %c0_193 = arith.constant 0 : index
    %217 = vector.load %arg10[%c0_191, %c0_192, %c0_193] : memref<8x16x32xf32, #tpu.memory_space<vmem>>, vector<8x16x32xf32>
    %218 = vector.shape_cast %216 : vector<16x32xf32> to vector<1x16x32xf32>
    %219 = vector.broadcast %218 : vector<1x16x32xf32> to vector<8x16x32xf32>
    %220 = arith.mulf %217, %219 : vector<8x16x32xf32>
    %cst_194 = arith.constant dense<0.000000e+00> : vector<8x16xf32>
    %221 = vector.multi_reduction <add>, %220, %cst_194 [2] : vector<8x16x32xf32> to vector<8x16xf32>
    %cst_195 = arith.constant dense<0.000000e+00> : vector<8xf32>
    %222 = vector.multi_reduction <add>, %221, %cst_195 [1] : vector<8x16xf32> to vector<8xf32>
    %223 = vector.shape_cast %222 : vector<8xf32> to vector<8x1xf32>
    %c0_196 = arith.constant 0 : index
    %c0_197 = arith.constant 0 : index
    %224 = vector.load %arg11[%c0_196, %c0_197] : memref<8x1xf32, #tpu.memory_space<vmem>>, vector<8x1xf32>
    %225 = arith.addf %223, %224 : vector<8x1xf32>
    %c0_198 = arith.constant 0 : index
    %c0_199 = arith.constant 0 : index
    %226 = vector.load %arg12[%c0_198, %c0_199] : memref<8x4xf32, #tpu.memory_space<vmem>>, vector<8x4xf32>
    %227 = vector.broadcast %225 : vector<8x1xf32> to vector<8x4xf32>
    %228 = arith.mulf %226, %227 : vector<8x4xf32>
    %cst_200 = arith.constant dense<0.000000e+00> : vector<4xf32>
    %229 = vector.multi_reduction <add>, %228, %cst_200 [0] : vector<8x4xf32> to vector<4xf32>
    %230 = vector.shape_cast %229 : vector<4xf32> to vector<1x4xf32>
    %c0_201 = arith.constant 0 : index
    %c0_202 = arith.constant 0 : index
    %231 = vector.load %arg13[%c0_201, %c0_202] : memref<1x4xf32, #tpu.memory_space<vmem>>, vector<1x4xf32>
    %232 = arith.addf %230, %231 : vector<1x4xf32>
    %c0_203 = arith.constant 0 : index
    %c0_204 = arith.constant 0 : index
    %233 = vector.load %arg14[%c0_203, %c0_204] : memref<1x4xf32, #tpu.memory_space<vmem>>, vector<1x4xf32>
    %234 = arith.mulf %233, %232 : vector<1x4xf32>
    %cst_205 = arith.constant dense<0.000000e+00> : vector<1xf32>
    %235 = vector.multi_reduction <add>, %234, %cst_205 [1] : vector<1x4xf32> to vector<1xf32>
    %236 = vector.shape_cast %235 : vector<1xf32> to vector<1x1xf32>
    %c0_206 = arith.constant 0 : index
    %c0_207 = arith.constant 0 : index
    %237 = vector.load %arg15[%c0_206, %c0_207] : memref<1x1xf32, #tpu.memory_space<vmem>>, vector<1x1xf32>
    %238 = arith.addf %236, %237 : vector<1x1xf32>
    %c0_208 = arith.constant 0 : index
    %c0_209 = arith.constant 0 : index
    %c0_210 = arith.constant 0 : index
    %239 = vector.load %arg16[%c0_208, %c0_209, %c0_210] : memref<1x1x1xf32, #tpu.memory_space<vmem>>, vector<1x1x1xf32>
    %240 = vector.shape_cast %239 : vector<1x1x1xf32> to vector<1x1xf32>
    %241 = vector.shape_cast %238 : vector<1x1xf32> to vector<1x1x1xf32>
    tpu.vector_store %arg16[%c0_208, %c0_209, %c0_210], %241 {strides = array<i32>} : memref<1x1x1xf32, #tpu.memory_space<vmem>>, vector<1x1x1xf32>,
    return
  }
  func.func @transform_0(%arg0: i32) -> (i32, i32, i32) {
    %c0_i32 = arith.constant 0 : i32
    %c0_i32_0 = arith.constant 0 : i32
    %c0_i32_1 = arith.constant 0 : i32
    return %arg0, %c0_i32, %c0_i32_0 : i32, i32, i32
  }
  func.func @transform_1(%arg0: i32) -> (i32, i32, i32) {
    %c0_i32 = arith.constant 0 : i32
    %c0_i32_0 = arith.constant 0 : i32
    %c0_i32_1 = arith.constant 0 : i32
    return %arg0, %c0_i32, %c0_i32_0 : i32, i32, i32
  }
  func.func @transform_2(%arg0: i32) -> (i32, i32) {
    %c0_i32 = arith.constant 0 : i32
    %c0_i32_0 = arith.constant 0 : i32
    %c0_i32_1 = arith.constant 0 : i32
    return %c0_i32, %c0_i32_0 : i32, i32
  }
  func.func @transform_3(%arg0: i32) -> (i32, i32) {
    %c0_i32 = arith.constant 0 : i32
    %c0_i32_0 = arith.constant 0 : i32
    %c0_i32_1 = arith.constant 0 : i32
    return %c0_i32, %c0_i32_0 : i32, i32
  }
  func.func @transform_4(%arg0: i32) -> (i32, i32) {
    %c0_i32 = arith.constant 0 : i32
    %c0_i32_0 = arith.constant 0 : i32
    %c0_i32_1 = arith.constant 0 : i32
    return %c0_i32, %c0_i32_0 : i32, i32
  }
  func.func @transform_5(%arg0: i32) -> (i32, i32) {
    %c0_i32 = arith.constant 0 : i32
    %c0_i32_0 = arith.constant 0 : i32
    %c0_i32_1 = arith.constant 0 : i32
    return %c0_i32, %c0_i32_0 : i32, i32
  }
  func.func @transform_6(%arg0: i32) -> (i32, i32, i32, i32) {
    %c0_i32 = arith.constant 0 : i32
    %c0_i32_0 = arith.constant 0 : i32
    %c0_i32_1 = arith.constant 0 : i32
    %c0_i32_2 = arith.constant 0 : i32
    %c0_i32_3 = arith.constant 0 : i32
    return %c0_i32, %c0_i32_0, %c0_i32_1, %c0_i32_2 : i32, i32, i32, i32
  }
  func.func @transform_7(%arg0: i32) -> (i32, i32, i32) {
    %c0_i32 = arith.constant 0 : i32
    %c0_i32_0 = arith.constant 0 : i32
    %c0_i32_1 = arith.constant 0 : i32
    %c0_i32_2 = arith.constant 0 : i32
    return %c0_i32, %c0_i32_0, %c0_i32_1 : i32, i32, i32
  }
  func.func @transform_8(%arg0: i32) -> (i32, i32, i32, i32) {
    %c0_i32 = arith.constant 0 : i32
    %c0_i32_0 = arith.constant 0 : i32
    %c0_i32_1 = arith.constant 0 : i32
    %c0_i32_2 = arith.constant 0 : i32
    %c0_i32_3 = arith.constant 0 : i32
    return %c0_i32, %c0_i32_0, %c0_i32_1, %c0_i32_2 : i32, i32, i32, i32
  }
  func.func @transform_9(%arg0: i32) -> (i32, i32, i32) {
    %c0_i32 = arith.constant 0 : i32
    %c0_i32_0 = arith.constant 0 : i32
    %c0_i32_1 = arith.constant 0 : i32
    %c0_i32_2 = arith.constant 0 : i32
    return %c0_i32, %c0_i32_0, %c0_i32_1 : i32, i32, i32
  }
  func.func @transform_10(%arg0: i32) -> (i32, i32) {
    %c0_i32 = arith.constant 0 : i32
    %c0_i32_0 = arith.constant 0 : i32
    %c0_i32_1 = arith.constant 0 : i32
    return %c0_i32, %c0_i32_0 : i32, i32
  }
  func.func @transform_11(%arg0: i32) -> (i32, i32) {
    %c0_i32 = arith.constant 0 : i32
    %c0_i32_0 = arith.constant 0 : i32
    %c0_i32_1 = arith.constant 0 : i32
    return %c0_i32, %c0_i32_0 : i32, i32
  }
  func.func @transform_12(%arg0: i32) -> (i32, i32) {
    %c0_i32 = arith.constant 0 : i32
    %c0_i32_0 = arith.constant 0 : i32
    %c0_i32_1 = arith.constant 0 : i32
    return %c0_i32, %c0_i32_0 : i32, i32
  }
  func.func @transform_13(%arg0: i32) -> (i32, i32) {
    %c0_i32 = arith.constant 0 : i32
    %c0_i32_0 = arith.constant 0 : i32
    %c0_i32_1 = arith.constant 0 : i32
    return %c0_i32, %c0_i32_0 : i32, i32
  }
  func.func @transform_14(%arg0: i32) -> (i32, i32) {
    %c0_i32 = arith.constant 0 : i32
    %c0_i32_0 = arith.constant 0 : i32
    %c0_i32_1 = arith.constant 0 : i32
    return %c0_i32, %c0_i32_0 : i32, i32
  }
  func.func @transform_15(%arg0: i32) -> (i32, i32, i32) {
    %c0_i32 = arith.constant 0 : i32
    %c0_i32_0 = arith.constant 0 : i32
    %c0_i32_1 = arith.constant 0 : i32
    return %arg0, %c0_i32, %c0_i32_0 : i32, i32, i32
  }
}

</mosaic_0001>

<bundles_post_ra>
// kernel: forward.1
= control target key start
LH: loop header
LB: loop body
LE: loop exit
PB: predicated region body
PF: predicated region fallthrough
CT: control target
= control target key end

     0   :  { %s2139_s20 = smov 0   ;;  %s2577_s0 = inlined_call_operand.vmem [shape: f32[2,32,8], index: 0, kind: input, shape index: {}]   ;;  %s2578_s1 = inlined_call_operand.vmem [shape: f32[2,32,8], index: 1, kind: input, shape index: {}]   ;;  %s2579_s2 = inlined_call_operand.vmem [shape: f32[8,8], index: 2, kind: input, shape index: {}]   ;;  %s2580_s3 = inlined_call_operand.vmem [shape: f32[8,1], index: 3, kind: input, shape index: {}]   ;;  %s2581_s4 = inlined_call_operand.vmem [shape: f32[8,8], index: 4, kind: input, shape index: {}]   ;;  %s2582_s5 = inlined_call_operand.vmem [shape: f32[8,1], index: 5, kind: input, shape index: {}]   ;;  %s2583_s6 = inlined_call_operand.vmem [shape: f32[2,9,16,1], index: 6, kind: input, shape index: {}]   ;;  %s2584_s7 = inlined_call_operand.vmem [shape: f32[2,16,16], index: 7, kind: input, shape index: {}]   ;;  %s2585_s8 = inlined_call_operand.vmem [shape: f32[2,6,16,1], index: 8, kind: input, shape index: {}]   ;;  %s2586_s9 = inlined_call_operand.vmem [shape: f32[8,16,32], index: 9, kind: input, shape index: {}]   ;;  %s2587_s10 = inlined_call_operand.vmem [shape: f32[8,1], index: 10, kind: input, shape index: {}]   ;;  %s2588_s11 = inlined_call_operand.vmem [shape: f32[8,4], index: 11, kind: input, shape index: {}]   ;;  %s2589_s12 = inlined_call_operand.vmem [shape: f32[1,4], index: 12, kind: input, shape index: {}]   ;;  %s2590_s13 = inlined_call_operand.vmem [shape: f32[1,4], index: 13, kind: input, shape index: {}]   ;;  %s2591_s14 = inlined_call_operand.<no memory space> [shape: f32[1,1], index: 14, kind: input, shape index: {}]   ;;  %s2592_s15 = inlined_call_operand.vmem [shape: f32[2,1,1], index: 15, kind: output, shape index: {}]  }
   0x1   :  { %v20_v0 = vstv %s2591_s14 }
   0x2   :  { %21 = vst [vmem:[#allocation3] sm:$0x1] %v20_v0 }
   0x3 LB: > { %s1833_s21 = sadd.s32 4294967295, %s2041_s20   ;;  %p1837_p0 = scmp.ge.s32.totalorder %s2041_s20, 1  ;;  %s2041_s20 = sphi %s2139_s20, %s27_s20  }
   0x4   : > { %p449_p1 = scmp.lt.s32.totalorder %s2041_s20, 3 }
   0x6   : > { %p450_p2 = pnand %p1837_p0, %p449_p1 }
   0x7   : > { %p500_p3 = scmp.lt.s32.totalorder (!%p450_p2), %s1833_s21, 1  ;;  %v2043_v1 = vmov (!%p450_p2), 0.0|0.0   ;;  %v518_v2 = vld [vmem:[%s2580_s3] sm:$0xff] (!%p450_p2)  ;;  %vm524_vm0 = vcmask (!%p450_p2), 64512   ;;  %vm2044_vm1 = vmmov (!%p450_p2), 0   ;;  %v2045_v3 = vmov (!%p450_p2), 0.0  }
   0x8   : > { %453 = sbr.rel (%p450_p2) target bundleno = 1942 (0x796), region = 80  ;;  %1972 = vmatprep.subr.bf16.mxu0 (!%p450_p2), %v2043_v1  ;;  %1980 = vmatprep.subr.bf16.mxu1 (!%p450_p2), %v2043_v1  ;;  %v2046_v4 = vmov (!%p450_p2), 0   ;;  %vm2160_vm2 = vmpackc.low (!%p450_p2), %vm524_vm0, %vm524_vm0  ;;  %v615_v6 = vld [vmem:[%s2582_s5] sm:$0xff] (!%p450_p2)  ;;  %v1853_v13 = vld [vmem:[%s2583_s6 + $0x18] sm:$0xff] (!%p450_p2)  ;;  %vm706_vm3 = vcmask (!%p450_p2), 326656   ;;  %s2047_s22 = smov (!%p450_p2), 4  }
   0x9   : > { %1944 = vmatprep.mubr.msk.f32.mxu0 (!%p450_p2), %vm2044_vm1, %v2045_v3  ;;  %1955 = vmatprep.mubr.msk.f32.mxu1 (!%p450_p2), %vm2044_vm1, %v2045_v3  ;;  %v1852_v14 = vld [vmem:[%s2583_s6 + $0x10] sm:$0xff] (!%p450_p2)  ;;  %v1855_v19 = vld [vmem:[%s2583_s6 + $0x28] sm:$0xff] (!%p450_p2)  ;;  %v1854_v21 = vld [vmem:[%s2583_s6 + $0x20] sm:$0xff] (!%p450_p2)  ;;  %707 = vst.msk [vmem:[#allocation2] sm:$0xff] (!%p450_p2), %vm706_vm3, %v2045_v3  ;;  %vm717_vm4 = vcmask (!%p450_p2), 293920   ;;  %s2048_s14 = smov (!%p450_p2), 127  }
   0xa   : > { %2017 = vset.pattern.permute.xlu0 (!%p450_p2), %v2046_v4  ;;  %2018 = vset.pattern.permute.xlu1 (!%p450_p2), %v2046_v4  ;;  %v1857_v23 = vld [vmem:[%s2583_s6 + $0x38] sm:$0xff] (!%p450_p2)  ;;  %v1856_v24 = vld [vmem:[%s2583_s6 + $0x30] sm:$0xff] (!%p450_p2)  ;;  %v1859_v25 = vld [vmem:[%s2583_s6 + $0x48] sm:$0xff] (!%p450_p2)  ;;  %708 = vst.msk [vmem:[#allocation2 + $0x8] sm:$0xff] (!%p450_p2), %vm706_vm3, %v2045_v3  ;;  %s2050_s24 = smov (!%p450_p2), 125   ;;  %s2601_s25 = smov (!%p450_p2), 124  }
   0xb   : > { %521 = vperm.xlu0 (!%p450_p2), %2017, %v518_v2   ;;  %762 = vperm.xlu1 (!%p450_p2), %2018, %v1853_v13   ;;  %v513_v26 = vld [vmem:[%s2579_s2] sm:$0xff] (!%p450_p2)  ;;  %v1860_v29 = vld [vmem:[%s2583_s6 + $0x50] sm:$0xff] (!%p450_p2)  ;;  %v1861_v43 = vld [vmem:[%s2583_s6 + $0x58] sm:$0xff] (!%p450_p2)  ;;  %s2597_s27 = smov (!%p450_p2), 123   ;;  %s2593_s28 = smov (!%p450_p2), 122   ;;  %vm1009_vm5 = vcmask (!%p450_p2), 130048  }
   0xc   : > { %v1858_v27 = vld [vmem:[%s2583_s6 + $0x40] sm:$0xff] (!%p450_p2)  ;;  %v1864_v31 = vld [vmem:[%s2583_s6 + $0x70] sm:$0xff] (!%p450_p2)  ;;  %v1863_v44 = vld [vmem:[%s2583_s6 + $0x68] sm:$0xff] (!%p450_p2)  ;;  %s2608_s17 = smov (!%p450_p2), 121   ;;  %s2609_s18 = smov (!%p450_p2), 120   ;;  %vm1586_vm6 = vcmask (!%p450_p2), 261120  }
   0xd   : > { %v610_v28 = vld [vmem:[%s2581_s4] sm:$0xff] (!%p450_p2)  ;;  %v1865_v45 = vld [vmem:[%s2583_s6 + $0x78] sm:$0xff] (!%p450_p2)  ;;  %v1867_v46 = vld [vmem:[%s2583_s6 + $0x88] sm:$0xff] (!%p450_p2)  ;;  %vm1662_vm7 = vcmask (!%p450_p2), 130112   ;;  %vm1727_vm8 = vcmask (!%p450_p2), 1041409   ;;  %vm1729_vm9 = vcmask (!%p450_p2), 1042434  }
   0xe   : > { %v1862_v30 = vld [vmem:[%s2583_s6 + $0x60] sm:$0xff] (!%p450_p2)  ;;  %v737_v47 = vld [vmem:[%s2583_s6 + $0x8] sm:$0xff] (!%p450_p2)  ;;  %vm1731_vm10 = vcmask (!%p450_p2), 1043459   ;;  %vm1733_vm11 = vcmask (!%p450_p2), 1044484   ;;  %vm1735_vm12 = vcmask (!%p450_p2), 1045509   ;;  %vm1737_vm13 = vcmask (!%p450_p2), 1046534  }
   0xf   : > { %s2611_s21 = smov (!%p500_p3, %s1833_s21), 1  ;;  %618 = vperm.xlu0 %2017, %v615_v6   ;;  %787 = vperm.xlu1 %2018, %v1855_v19   ;;  %v1866_v32 = vld [vmem:[%s2583_s6 + $0x80] sm:$0xff]  ;;  %v721_v48 = vld [vmem:[%s2585_s8 + $0x8] sm:$0xff]  ;;  %vm1739_vm14 = vcmask 1047559   ;;  %vm1754_vm15 = vcmask 31744   ;;  %vm1772_vm1 = vcmask 0  }
  0x10   : > { %s1916_s23 = sshll.u32 %s2611_s21, 5  ;;  %v736_v33 = vld [vmem:[%s2583_s6] sm:$0xff] }
  0x11   : > { %s504_s26 = scalar_lea.vmem %s2577_s0, %s1916_s23  ;;  %s509_s29 = scalar_lea.vmem %s2578_s1, %s1916_s23  ;;  %v720_v34 = vld [vmem:[%s2585_s8] sm:$0xff] }
  0x12   : > { %v514_v7 = vld [vmem:[%s504_s26] sm:$0xff]  ;;  %v515_v8 = vld [vmem:[%s504_s26 + $0x8] sm:$0xff]  ;;  %v516_v15 = vld [vmem:[%s504_s26 + $0x10] sm:$0xff]  ;;  %s2049_s23 = smov 126  }
  0x13   : > { %v611_v9 = vld [vmem:[%s509_s29] sm:$0xff]  ;;  %v1973_v10 = vpack.c.bf16 %v515_v8, %v514_v7  ;;  %v612_v11 = vld [vmem:[%s509_s29 + $0x8] sm:$0xff]  ;;  %v517_v16 = vld [vmem:[%s504_s26 + $0x18] sm:$0xff]  ;;  %757 = vperm.xlu0 %2017, %v1852_v14   ;;  %812 = vperm.xlu1 %2018, %v1857_v23   ;;  %s2595_s26 = smov 121  }
  0x14   : > { %v1981_v12 = vpack.c.bf16 %v612_v11, %v611_v9  ;;  %v613_v17 = vld [vmem:[%s509_s29 + $0x10] sm:$0xff]  ;;  %v614_v18 = vld [vmem:[%s509_s29 + $0x18] sm:$0xff]  ;;  %v1977_v20 = vpack.c.bf16 %v517_v16, %v516_v15  ;;  %s2599_s29 = smov 120  }
  0x15   : > { %1975 = vmatpush3.bf16.xpose.msk.msra.mxu0 %vm2160_vm2, %v1973_v10  ;;  %v1985_v22 = vpack.c.bf16 %v614_v18, %v613_v17  ;;  %v1869_v23 = vld [vmem:[%s2585_s8 + $0x18] sm:$0xff] }
  0x16   : > { %1983 = vmatpush3.bf16.xpose.msk.msra.mxu1 %vm2160_vm2, %v1981_v12  ;;  %1976 = vmatprep.subr.bf16.mxu0 %v2043_v1 }
  0x17   : > { %1984 = vmatprep.subr.bf16.mxu1 %v2043_v1  ;;  %782 = vperm.xlu0 %2017, %v1854_v21  }
  0x18   : > { %837 = vperm.xlu1 %2018, %v1859_v25   ;;  %v1871_v25 = vld [vmem:[%s2585_s8 + $0x28] sm:$0xff] }
  0x1b   : > { %807 = vperm.xlu0 %2017, %v1856_v24   ;;  %v1872_v24 = vld [vmem:[%s2585_s8 + $0x30] sm:$0xff] }
  0x1d   : > { %1979 = vmatpush3.bf16.xpose.msk.msra.mxu0 %vm2160_vm2, %v1977_v20  ;;  %v1868_v20 = vld [vmem:[%s2585_s8 + $0x10] sm:$0xff] }
  0x1e   : > { %1987 = vmatpush3.bf16.xpose.msk.msra.mxu1 %vm2160_vm2, %v1985_v22  ;;  %v1870_v22 = vld [vmem:[%s2585_s8 + $0x20] sm:$0xff] }
  0x1f   : > { %832 = vperm.xlu0 %2017, %v1858_v27   ;;  %v1873_v27 = vld [vmem:[%s2585_s8 + $0x38] sm:$0xff] }
  0x23   : > { %857 = vperm.xlu0 %2017, %v1860_v29   ;;  %v1877_v29 = vld [vmem:[%s2585_s8 + $0x48] sm:$0xff] }
  0x24   : > { %1945 = vmatmul.mubr.msk.f32.vlgmr.msra.gmra.mrb[0].mxu0 %vm524_vm0, %v513_v26  ;;  %v1876_v26 = vld [vmem:[%s2585_s8 + $0x40] sm:$0xff] }
  0x25   : > { %1956 = vmatmul.mubr.msk.f32.vlgmr.msra.gmra.mrb[0].mxu1 %vm524_vm0, %v610_v28  ;;  %v1878_v28 = vld [vmem:[%s2585_s8 + $0x50] sm:$0xff]  ;;  %vm1766_vm0 = vcmask 24576  }
  0x27   : > { %882 = vperm.xlu0 %2017, %v1862_v30   ;;  %v994_v30 = vld [vmem:[%s2584_s7] sm:$0xff] }
  0x28   : > { %1962 = vmatprep.mubr.msk.f32.mxu0 %vm1009_vm5, %v994_v30 }
  0x2b   : > { %907 = vperm.xlu0 %2017, %v1864_v31   ;;  %v1884_v31 = vld [vmem:[%s2583_s6 + $0xa0] sm:$0xff] }
  0x2f   : > { %932 = vperm.xlu0 %2017, %v1866_v32   ;;  %v1879_v32 = vld [vmem:[%s2585_s8 + $0x58] sm:$0xff] }
  0x33   : > { %740 = vperm.xlu0 %2017, %v736_v33   ;;  %v1886_v33 = vld [vmem:[%s2583_s6 + $0xb0] sm:$0xff] }
  0x37   : > { %724 = vperm.xlu0 %2017, %v720_v34   ;;  %v1885_v34 = vld [vmem:[%s2583_s6 + $0xa8] sm:$0xff] }
  0x8a   : > { %v522_v35 = vpop.permute.xlu0 %521  ;;  %v763_v49 = vpop.permute.xlu1 %762 }
  0x8e   : > { %v619_v41 = vpop.permute.xlu0 %618  ;;  %v788_v50 = vpop.permute.xlu1 %787 }
  0x92   : > { %v813_v51 = vpop.permute.xlu1 %812  ;;  %v758_v52 = vpop.permute.xlu0 %757 }
  0x96   : > { %v783_v54 = vpop.permute.xlu0 %782 }
  0x97   : > { %v838_v53 = vpop.permute.xlu1 %837 }
  0x9a   : > { %v808_v57 = vpop.permute.xlu0 %807 }
  0x9e   : > { %v833_v60 = vpop.permute.xlu0 %832 }
  0xa2   : > { %v858_v2 = vpop.permute.xlu0 %857 }
  0xa6   : > { %v883_v6 = vpop.permute.xlu0 %882 }
  0xaa   : > { %v908_v12 = vpop.permute.xlu0 %907 }
  0xae   : > { %v933_v16 = vpop.permute.xlu0 %932 }
  0xf7   : > { %v606_v36 = vpop.f32.mrb[0].mxu0 }
  0xf8   : > { %v2230_v37 = vadd.f32 %v606_v36, %v522_v35  ;;  %v702_v38 = vpop.f32.mrb[0].mxu1  ;;  %v1946_v39 = vpop.f32.mrb[1].mxu0  ;;  %v1888_v35 = vld [vmem:[%s2583_s6 + $0xc0] sm:$0xff]  ;;  %v1887_v36 = vld [vmem:[%s2583_s6 + $0xb8] sm:$0xff] }
  0xf9   : > { %v1957_v40 = vpop.f32.mrb[1].mxu1  ;;  %v2234_v42 = vadd.f32 %v702_v38, %v619_v41  ;;  %v1890_v38 = vld [vmem:[%s2583_s6 + $0xd0] sm:$0xff]  ;;  %v1889_v39 = vld [vmem:[%s2583_s6 + $0xc8] sm:$0xff]  ;;  %v741_v41 = vpop.permute.xlu0 %740 }
  0xfa   : > { %711 = vrot.lane.b32.xlu1 %v2230_v37, %s2047_s22  ;;  %v1891_v40 = vld [vmem:[%s2583_s6 + $0xd8] sm:$0xff] }
  0xfe   : > { %713 = vrot.lane.b32.xlu1 %v2234_v42, %s2047_s22 }
 0x102   : > { %862 = vperm.xlu1 %2018, %v1861_v43  }
 0x106   : > { %887 = vperm.xlu1 %2018, %v1863_v44   ;;  %v725_v44 = vpop.permute.xlu0 %724 }
 0x10a   : > { %912 = vperm.xlu1 %2018, %v1865_v45  }
 0x10e   : > { %937 = vperm.xlu1 %2018, %v1867_v46  }
 0x112   : > { %745 = vperm.xlu1 %2018, %v737_v47  }
 0x116   : > { %729 = vperm.xlu1 %2018, %v721_v48  }
 0x16c   : > { %v712_v55 = vpop.permute.xlu1 %711 }
 0x16d   : > { %718 = vst.msk [vmem:[#allocation2] sm:$0xff] %vm717_vm4, %v712_v55 }
 0x170   : > { %v714_v56 = vpop.permute.xlu1 %713 }
 0x171   : > { %719 = vst.msk [vmem:[#allocation2 + $0x8] sm:$0xff] %vm717_vm4, %v714_v56 }
 0x174   : > { %v2258_v58 = vld [vmem:[#allocation2] sm:$0xff] }
 0x175   : > { %v765_v59 = vmul.f32 %v758_v52, %v2258_v58  ;;  %v790_v62 = vmul.f32 %v783_v54, %v2258_v58  ;;  %v815_v0 = vmul.f32 %v808_v57, %v2258_v58  ;;  %v840_v4 = vmul.f32 %v833_v60, %v2258_v58 }
 0x176   : > { %v865_v7 = vmul.f32 %v858_v2, %v2258_v58  ;;  %v890_v11 = vmul.f32 %v883_v6, %v2258_v58  ;;  %v915_v15 = vmul.f32 %v908_v12, %v2258_v58  ;;  %v940_v18 = vmul.f32 %v933_v16, %v2258_v58 }
 0x177   : > { %769 = vrot.lane.b32.xlu0 %v765_v59, %s2048_s14 }
 0x178   : > { %v2262_v61 = vld [vmem:[#allocation2 + $0x8] sm:$0xff] }
 0x179   : > { %v766_v63 = vmul.f32 %v763_v49, %v2262_v61  ;;  %v791_v1 = vmul.f32 %v788_v50, %v2262_v61  ;;  %v816_v5 = vmul.f32 %v813_v51, %v2262_v61  ;;  %v841_v8 = vmul.f32 %v838_v53, %v2262_v61 }
 0x17a   : > { %v748_v51 = vmul.f32 %v741_v41, %v2258_v58 }
 0x17b   : > { %794 = vrot.lane.b32.xlu0 %v790_v62, %s2049_s23  ;;  %771 = vrot.lane.b32.xlu1 %v766_v63, %s2048_s14 }
 0x17c   : > { %v750_v54 = vadd.f32 %v748_v51, %v725_v44 }
 0x17f   : > { %819 = vrot.lane.b32.xlu0 %v815_v0, %s2050_s24  ;;  %796 = vrot.lane.b32.xlu1 %v791_v1, %s2049_s23 }
 0x181   : > { %v863_v3 = vpop.permute.xlu1 %862 }
 0x182   : > { %v866_v10 = vmul.f32 %v863_v3, %v2262_v61 }
 0x183   : > { %844 = vrot.lane.b32.xlu0 %v840_v4, %s2601_s25  ;;  %821 = vrot.lane.b32.xlu1 %v816_v5, %s2050_s24 }
 0x185   : > { %v888_v9 = vpop.permute.xlu1 %887 }
 0x186   : > { %v891_v14 = vmul.f32 %v888_v9, %v2262_v61 }
 0x187   : > { %869 = vrot.lane.b32.xlu0 %v865_v7, %s2597_s27  ;;  %846 = vrot.lane.b32.xlu1 %v841_v8, %s2601_s25 }
 0x189   : > { %v913_v13 = vpop.permute.xlu1 %912 }
 0x18a   : > { %v916_v17 = vmul.f32 %v913_v13, %v2262_v61 }
 0x18b   : > { %894 = vrot.lane.b32.xlu0 %v890_v11, %s2593_s28  ;;  %871 = vrot.lane.b32.xlu1 %v866_v10, %s2597_s27 }
 0x18d   : > { %v938_v19 = vpop.permute.xlu1 %937 }
 0x18e   : > { %v941_v21 = vmul.f32 %v938_v19, %v2262_v61 }
 0x18f   : > { %919 = vrot.lane.b32.xlu0 %v915_v15, %s2595_s26  ;;  %896 = vrot.lane.b32.xlu1 %v891_v14, %s2593_s28 }
 0x191   : > { %v746_v43 = vpop.permute.xlu1 %745 }
 0x192   : > { %v749_v55 = vmul.f32 %v746_v43, %v2262_v61 }
 0x193   : > { %944 = vrot.lane.b32.xlu0 %v940_v18, %s2599_s29  ;;  %921 = vrot.lane.b32.xlu1 %v916_v17, %s2595_s26 }
 0x195   : > { %v730_v45 = vpop.permute.xlu1 %729 }
 0x196   : > { %v751_v60 = vadd.f32 %v749_v55, %v730_v45 }
 0x197   : > { %967 = vperm.xlu0 %2017, %v1868_v20   ;;  %946 = vrot.lane.b32.xlu1 %v941_v21, %s2599_s29 }
 0x19b   : > { %982 = vperm.xlu0 %2017, %v1870_v22   ;;  %972 = vperm.xlu1 %2018, %v1869_v23  }
 0x19f   : > { %1001 = vperm.xlu0 %2017, %v1872_v24   ;;  %987 = vperm.xlu1 %2018, %v1871_v25  }
 0x1a3   : > { %1106 = vperm.xlu0 %2017, %v1876_v26   ;;  %1006 = vperm.xlu1 %2018, %v1873_v27  }
 0x1a7   : > { %1121 = vperm.xlu0 %2017, %v1878_v28   ;;  %1111 = vperm.xlu1 %2018, %v1877_v29  }
 0x1ab   : > { %1180 = vperm.xlu0 %2017, %v1884_v31   ;;  %1126 = vperm.xlu1 %2018, %v1879_v32  }
 0x1af   : > { %1205 = vperm.xlu0 %2017, %v1886_v33   ;;  %1185 = vperm.xlu1 %2018, %v1885_v34  }
 0x1b3   : > { %1230 = vperm.xlu0 %2017, %v1888_v35   ;;  %1210 = vperm.xlu1 %2018, %v1887_v36  }
 0x1b7   : > { %1255 = vperm.xlu0 %2017, %v1890_v38   ;;  %1235 = vperm.xlu1 %2018, %v1889_v39  }
 0x1bb   : > { %1260 = vperm.xlu1 %2018, %v1891_v40   ;;  %v995_v40 = vld [vmem:[%s2584_s7 + $0x8] sm:$0xff] }
 0x1e9   : > { %v770_v46 = vpop.permute.xlu0 %769 }
 0x1ea   : > { %v775_v56 = vadd.f32 %v770_v46, %v750_v54 }
 0x1ed   : > { %v795_v47 = vpop.permute.xlu0 %794  ;;  %v772_v48 = vpop.permute.xlu1 %771 }
 0x1ee   : > { %v800_v62 = vadd.f32 %v795_v47, %v775_v56  ;;  %v776_v63 = vadd.f32 %v772_v48, %v751_v60 }
 0x1f1   : > { %v820_v49 = vpop.permute.xlu0 %819  ;;  %v797_v50 = vpop.permute.xlu1 %796 }
 0x1f2   : > { %v825_v0 = vadd.f32 %v820_v49, %v800_v62  ;;  %v801_v3 = vadd.f32 %v797_v50, %v776_v63 }
 0x1f5   : > { %v845_v52 = vpop.permute.xlu0 %844  ;;  %v822_v53 = vpop.permute.xlu1 %821 }
 0x1f6   : > { %v850_v4 = vadd.f32 %v845_v52, %v825_v0  ;;  %v826_v5 = vadd.f32 %v822_v53, %v801_v3  ;;  %v1892_v3 = vld [vmem:[%s2583_s6 + $0xe0] sm:$0xff] }
 0x1f9   : > { %v870_v57 = vpop.permute.xlu0 %869  ;;  %v847_v59 = vpop.permute.xlu1 %846 }
 0x1fa   : > { %v875_v6 = vadd.f32 %v870_v57, %v850_v4  ;;  %v851_v8 = vadd.f32 %v847_v59, %v826_v5  ;;  %v1895_v4 = vld [vmem:[%s2583_s6 + $0xf8] sm:$0xff]  ;;  %v1894_v5 = vld [vmem:[%s2583_s6 + $0xf0] sm:$0xff] }
 0x1fd   : > { %v895_v1 = vpop.permute.xlu0 %894  ;;  %v872_v2 = vpop.permute.xlu1 %871 }
 0x1fe   : > { %v900_v9 = vadd.f32 %v895_v1, %v875_v6  ;;  %v876_v10 = vadd.f32 %v872_v2, %v851_v8  ;;  %v1893_v2 = vld [vmem:[%s2583_s6 + $0xe8] sm:$0xff]  ;;  %v1898_v8 = vld [vmem:[%s2583_s6 + $0x110] sm:$0xff] }
 0x1ff   : > { %v1897_v6 = vld [vmem:[%s2583_s6 + $0x108] sm:$0xff] }
 0x201   : > { %v920_v7 = vpop.permute.xlu0 %919  ;;  %v897_v58 = vpop.permute.xlu1 %896 }
 0x202   : > { %v925_v11 = vadd.f32 %v920_v7, %v900_v9  ;;  %v901_v13 = vadd.f32 %v897_v58, %v876_v10  ;;  %v1896_v7 = vld [vmem:[%s2583_s6 + $0x100] sm:$0xff]  ;;  %v1899_v58 = vld [vmem:[%s2583_s6 + $0x118] sm:$0xff]  ;;  %v1882_v10 = vld [vmem:[%s2583_s6 + $0x90] sm:$0xff] }
 0x203   : > { %v1883_v9 = vld [vmem:[%s2583_s6 + $0x98] sm:$0xff] }
 0x205   : > { %v945_v61 = vpop.permute.xlu0 %944  ;;  %v922_v12 = vpop.permute.xlu1 %921 }
 0x206   : > { %v950_v14 = vadd.f32 %v945_v61, %v925_v11  ;;  %v926_v16 = vadd.f32 %v922_v12, %v901_v13  ;;  %v1881_v11 = vld [vmem:[%s2585_s8 + $0x68] sm:$0xff]  ;;  %v1880_v61 = vld [vmem:[%s2585_s8 + $0x60] sm:$0xff] }
 0x208   : > { %v954_v15 = vmul.f32 0.70710677, %v950_v14  ;;  %v952_v21 = vmul.f32 0.5, %v950_v14 }
 0x209   : > { %v947_v17 = vpop.permute.xlu1 %946 }
 0x20a   : > { %2019 = verf.f32 %v954_v15  ;;  %v951_v18 = vadd.f32 %v947_v17, %v926_v16 }
 0x20c   : > { %v955_v19 = vmul.f32 0.70710677, %v951_v18  ;;  %v953_v26 = vmul.f32 0.5, %v951_v18 }
 0x20e   : > { %2021 = verf.f32 %v955_v19 }
 0x214   : > { %v2020_v20 = vpop.eup %2019 }
 0x215   : > { %v958_v22 = vadd.f32 1.0, %v2020_v20 }
 0x216   : > { %v968_v23 = vpop.permute.xlu0 %967 }
 0x217   : > { %v960_v24 = vmul.f32 %v958_v22, %v952_v21 }
 0x218   : > { %v2022_v25 = vpop.eup %2021 }
 0x219   : > { %v975_v27 = vmul.f32 %v968_v23, %v960_v24  ;;  %v959_v28 = vadd.f32 1.0, %v2022_v25 }
 0x21a   : > { %v983_v29 = vpop.permute.xlu0 %982  ;;  %v973_v30 = vpop.permute.xlu1 %972 }
 0x21b   : > { %v961_v31 = vmul.f32 %v959_v28, %v953_v26  ;;  %v990_v32 = vadd.f32 %v983_v29, %v975_v27 }
 0x21d   : > { %v976_v33 = vmul.f32 %v973_v30, %v961_v31  ;;  %v992_v36 = vadd.f32 %v990_v32, %v2230_v37 }
 0x21e   : > { %v988_v34 = vpop.permute.xlu1 %987  ;;  %v1002_v44 = vpop.permute.xlu0 %1001 }
 0x21f   : > { %v991_v35 = vadd.f32 %v988_v34, %v976_v33 }
 0x221   : > { %v993_v38 = vadd.f32 %v991_v35, %v2234_v42 }
 0x222   : > { %v1007_v41 = vpop.permute.xlu1 %1006  ;;  %v1107_v51 = vpop.permute.xlu0 %1106 }
 0x223   : > { %v1988_v39 = vpack.c.bf16 %v993_v38, %v992_v36 }
 0x225   : > { %1989 = vmatprep.subr.bf16.mxu0 %v1988_v39 }
 0x226   : > { %1991 = vmatpush3.bf16.msra.mxu0 %v1988_v39  ;;  %v1112_v42 = vpop.permute.xlu1 %1111  ;;  %v1122_v63 = vpop.permute.xlu0 %1121 }
 0x229   : > { %1963 = vmatmul.mubr.msk.f32.vlgmr.msra.gmra.mrb[2].mxu0 %vm1009_vm5, %v995_v40 }
 0x22a   : > { %v1127_v60 = vpop.permute.xlu1 %1126  ;;  %v1181_v13 = vpop.permute.xlu0 %1180 }
 0x22e   : > { %v1186_v12 = vpop.permute.xlu1 %1185  ;;  %v1206_v15 = vpop.permute.xlu0 %1205 }
 0x232   : > { %v1211_v14 = vpop.permute.xlu1 %1210  ;;  %v1231_v17 = vpop.permute.xlu0 %1230 }
 0x236   : > { %v1236_v16 = vpop.permute.xlu1 %1235  ;;  %v1256_v19 = vpop.permute.xlu0 %1255 }
 0x23a   : > { %v1261_v18 = vpop.permute.xlu1 %1260 }
 0x2fc   : > { %v1964_v43 = vpop.f32.mrb[2].mxu0 }
 0x2fd   : > { %v1088_v45 = vadd.f32 %v1964_v43, %v1007_v41  ;;  %v1082_v46 = vpop.f32.mrb[3].mxu0 }
 0x2fe   : > { %v1083_v47 = vadd.f32 %v1082_v46, %v1002_v44 }
 0x2ff   : > { %v1094_v48 = vmul.f32 0.70710677, %v1088_v45  ;;  %v1092_v52 = vmul.f32 0.5, %v1088_v45 }
 0x300   : > { %v1093_v49 = vmul.f32 0.70710677, %v1083_v47  ;;  %v1091_v54 = vmul.f32 0.5, %v1083_v47 }
 0x301   : > { %2023 = verf.f32 %v1094_v48 }
 0x302   : > { %2025 = verf.f32 %v1093_v49 }
 0x30b   : > { %v2024_v37 = vpop.eup %2023 }
 0x30c   : > { %v2026_v50 = vpop.eup %2025  ;;  %v1098_v53 = vadd.f32 1.0, %v2024_v37  ;;  %v1901_v37 = vld [vmem:[%s2585_s8 + $0x78] sm:$0xff] }
 0x30d   : > { %v1097_v55 = vadd.f32 1.0, %v2026_v50  ;;  %v1903_v50 = vld [vmem:[%s2585_s8 + $0x88] sm:$0xff] }
 0x30e   : > { %v1100_v56 = vmul.f32 %v1098_v53, %v1092_v52  ;;  %v1907_v52 = vld [vmem:[%s2585_s8 + $0x98] sm:$0xff]  ;;  %v1906_v53 = vld [vmem:[%s2585_s8 + $0x90] sm:$0xff] }
 0x30f   : > { %v1099_v57 = vmul.f32 %v1097_v55, %v1091_v54  ;;  %v1911_v54 = vld [vmem:[%s2585_s8 + $0xa8] sm:$0xff]  ;;  %v1910_v55 = vld [vmem:[%s2585_s8 + $0xa0] sm:$0xff] }
 0x310   : > { %v1115_v59 = vmul.f32 %v1112_v42, %v1100_v56  ;;  %v1900_v42 = vld [vmem:[%s2585_s8 + $0x70] sm:$0xff] }
 0x311   : > { %v1114_v62 = vmul.f32 %v1107_v51, %v1099_v57  ;;  %v1902_v51 = vld [vmem:[%s2585_s8 + $0x80] sm:$0xff]  ;;  %v1904_v56 = vld [vmem:[%s2584_s7 + $0x10] sm:$0xff]  ;;  %v1913_v57 = vld [vmem:[%s2585_s8 + $0xb8] sm:$0xff] }
 0x312   : > { %v2360_v0 = vadd.f32 %v1127_v60, %v1115_v59  ;;  %1969 = vmatprep.mubr.msk.f32.mxu1 %vm1009_vm5, %v1904_v56  ;;  %v1912_v59 = vld [vmem:[%s2585_s8 + $0xb0] sm:$0xff] }
 0x313   : > { %v2362_v1 = vadd.f32 %v1122_v63, %v1114_v62 }
 0x314   : > { %1135 = vrot.lane.b32.xlu1 %v2360_v0, %s2047_s22 }
 0x315   : > { %1133 = vrot.lane.b32.xlu0 %v2362_v1, %s2047_s22 }
 0x318   : > { %1285 = vperm.xlu1 %2018, %v1893_v2  }
 0x319   : > { %1280 = vperm.xlu0 %2017, %v1892_v3  }
 0x31c   : > { %1310 = vperm.xlu1 %2018, %v1895_v4  }
 0x31d   : > { %1305 = vperm.xlu0 %2017, %v1894_v5  }
 0x320   : > { %1335 = vperm.xlu1 %2018, %v1897_v6  }
 0x321   : > { %1330 = vperm.xlu0 %2017, %v1896_v7  }
 0x324   : > { %1360 = vperm.xlu1 %2018, %v1899_v58  }
 0x325   : > { %1355 = vperm.xlu0 %2017, %v1898_v8  }
 0x328   : > { %1168 = vperm.xlu1 %2018, %v1883_v9  }
 0x329   : > { %1163 = vperm.xlu0 %2017, %v1882_v10  }
 0x32c   : > { %1151 = vperm.xlu1 %2018, %v1881_v11  }
 0x32d   : > { %1146 = vperm.xlu0 %2017, %v1880_v61  }
 0x386   : > { %v1136_v20 = vpop.permute.xlu1 %1135 }
 0x387   : > { %1140 = vst.msk [vmem:[#allocation2 + $0x8] sm:$0xff] %vm717_vm4, %v1136_v20  ;;  %v1134_v21 = vpop.permute.xlu0 %1133 }
 0x388   : > { %1139 = vst.msk [vmem:[#allocation2] sm:$0xff] %vm717_vm4, %v1134_v21 }
 0x38e   : > { %v2406_v22 = vld [vmem:[#allocation2 + $0x8] sm:$0xff] }
 0x38f   : > { %v1189_v23 = vmul.f32 %v1186_v12, %v2406_v22  ;;  %v2409_v24 = vld [vmem:[#allocation2] sm:$0xff]  ;;  %v1214_v26 = vmul.f32 %v1211_v14, %v2406_v22  ;;  %v1239_v29 = vmul.f32 %v1236_v16, %v2406_v22  ;;  %v1264_v32 = vmul.f32 %v1261_v18, %v2406_v22 }
 0x390   : > { %v1188_v25 = vmul.f32 %v1181_v13, %v2409_v24  ;;  %v1213_v27 = vmul.f32 %v1206_v15, %v2409_v24  ;;  %v1238_v31 = vmul.f32 %v1231_v17, %v2409_v24  ;;  %v1263_v34 = vmul.f32 %v1256_v19, %v2409_v24 }
 0x391   : > { %1194 = vrot.lane.b32.xlu1 %v1189_v23, %s2048_s14 }
 0x392   : > { %1192 = vrot.lane.b32.xlu0 %v1188_v25, %s2048_s14  ;;  %s2605_s14 = smov 124  }
 0x395   : > { %1219 = vrot.lane.b32.xlu1 %v1214_v26, %s2049_s23 }
 0x396   : > { %1217 = vrot.lane.b32.xlu0 %v1213_v27, %s2049_s23  ;;  %s2606_s23 = smov 123  }
 0x397   : > { %v1286_v28 = vpop.permute.xlu1 %1285 }
 0x398   : > { %v1281_v30 = vpop.permute.xlu0 %1280  ;;  %v1289_v36 = vmul.f32 %v1286_v28, %v2406_v22 }
 0x399   : > { %1244 = vrot.lane.b32.xlu1 %v1239_v29, %s2050_s24  ;;  %v1288_v38 = vmul.f32 %v1281_v30, %v2409_v24 }
 0x39a   : > { %1242 = vrot.lane.b32.xlu0 %v1238_v31, %s2050_s24  ;;  %s2607_s24 = smov 122  }
 0x39b   : > { %v1311_v33 = vpop.permute.xlu1 %1310 }
 0x39c   : > { %v1306_v35 = vpop.permute.xlu0 %1305  ;;  %v1314_v40 = vmul.f32 %v1311_v33, %v2406_v22 }
 0x39d   : > { %1269 = vrot.lane.b32.xlu1 %v1264_v32, %s2605_s14  ;;  %v1313_v43 = vmul.f32 %v1306_v35, %v2409_v24 }
 0x39e   : > { %1267 = vrot.lane.b32.xlu0 %v1263_v34, %s2605_s14 }
 0x39f   : > { %v1336_v39 = vpop.permute.xlu1 %1335 }
 0x3a0   : > { %v1331_v41 = vpop.permute.xlu0 %1330  ;;  %v1339_v44 = vmul.f32 %v1336_v39, %v2406_v22 }
 0x3a1   : > { %1294 = vrot.lane.b32.xlu1 %v1289_v36, %s2606_s23  ;;  %v1338_v45 = vmul.f32 %v1331_v41, %v2409_v24 }
 0x3a2   : > { %1292 = vrot.lane.b32.xlu0 %v1288_v38, %s2606_s23  ;;  %s512_s23 = scalar_lea.vmem %s2592_s15, %s2611_s21 }
 0x3a3   : > { %v1361_v46 = vpop.permute.xlu1 %1360 }
 0x3a4   : > { %v1356_v47 = vpop.permute.xlu0 %1355  ;;  %v1364_v48 = vmul.f32 %v1361_v46, %v2406_v22 }
 0x3a5   : > { %1319 = vrot.lane.b32.xlu1 %v1314_v40, %s2607_s24  ;;  %v1363_v49 = vmul.f32 %v1356_v47, %v2409_v24 }
 0x3a6   : > { %1317 = vrot.lane.b32.xlu0 %v1313_v43, %s2607_s24 }
 0x3a7   : > { %v1169_v60 = vpop.permute.xlu1 %1168 }
 0x3a8   : > { %v1164_v62 = vpop.permute.xlu0 %1163  ;;  %v1172_v8 = vmul.f32 %v1169_v60, %v2406_v22 }
 0x3a9   : > { %1344 = vrot.lane.b32.xlu1 %v1339_v44, %s2608_s17  ;;  %v1171_v9 = vmul.f32 %v1164_v62, %v2409_v24 }
 0x3aa   : > { %1342 = vrot.lane.b32.xlu0 %v1338_v45, %s2608_s17 }
 0x3ab   : > { %v1152_v63 = vpop.permute.xlu1 %1151 }
 0x3ac   : > { %v1147_v2 = vpop.permute.xlu0 %1146  ;;  %v1174_v11 = vadd.f32 %v1172_v8, %v1152_v63 }
 0x3ad   : > { %1369 = vrot.lane.b32.xlu1 %v1364_v48, %s2609_s18  ;;  %v1173_v12 = vadd.f32 %v1171_v9, %v1147_v2 }
 0x3ae   : > { %1367 = vrot.lane.b32.xlu0 %v1363_v49, %s2609_s18 }
 0x3b1   : > { %1395 = vperm.xlu1 %2018, %v1901_v37  }
 0x3b2   : > { %1390 = vperm.xlu0 %2017, %v1900_v42  }
 0x3b5   : > { %1410 = vperm.xlu1 %2018, %v1903_v50  }
 0x3b6   : > { %1405 = vperm.xlu0 %2017, %v1902_v51  }
 0x3b9   : > { %1430 = vperm.xlu1 %2018, %v1907_v52  }
 0x3ba   : > { %1425 = vperm.xlu0 %2017, %v1906_v53  }
 0x3bd   : > { %1534 = vperm.xlu1 %2018, %v1911_v54  }
 0x3be   : > { %1529 = vperm.xlu0 %2017, %v1910_v55  }
 0x3c1   : > { %1549 = vperm.xlu1 %2018, %v1913_v57  }
 0x3c2   : > { %1544 = vperm.xlu0 %2017, %v1912_v59   ;;  %v1905_v59 = vld [vmem:[%s2584_s7 + $0x18] sm:$0xff] }
 0x403   : > { %v1195_v3 = vpop.permute.xlu1 %1194 }
 0x404   : > { %v1193_v4 = vpop.permute.xlu0 %1192  ;;  %v1199_v13 = vadd.f32 %v1195_v3, %v1174_v11 }
 0x405   : > { %v1198_v14 = vadd.f32 %v1193_v4, %v1173_v12 }
 0x407   : > { %v1220_v5 = vpop.permute.xlu1 %1219 }
 0x408   : > { %v1218_v6 = vpop.permute.xlu0 %1217  ;;  %v1224_v16 = vadd.f32 %v1220_v5, %v1199_v13 }
 0x409   : > { %v1223_v18 = vadd.f32 %v1218_v6, %v1198_v14 }
 0x40b   : > { %v1245_v7 = vpop.permute.xlu1 %1244 }
 0x40c   : > { %v1243_v58 = vpop.permute.xlu0 %1242  ;;  %v1249_v19 = vadd.f32 %v1245_v7, %v1224_v16  ;;  %v1557_v16 = vld [vmem:[%s2586_s9 + $0x18] sm:$0xff] }
 0x40d   : > { %v1248_v20 = vadd.f32 %v1243_v58, %v1223_v18 }
 0x40f   : > { %v1270_v10 = vpop.permute.xlu1 %1269 }
 0x410   : > { %v1268_v61 = vpop.permute.xlu0 %1267  ;;  %v1274_v23 = vadd.f32 %v1270_v10, %v1249_v19 }
 0x411   : > { %v1273_v26 = vadd.f32 %v1268_v61, %v1248_v20 }
 0x413   : > { %v1295_v15 = vpop.permute.xlu1 %1294 }
 0x414   : > { %v1293_v17 = vpop.permute.xlu0 %1292  ;;  %v1299_v27 = vadd.f32 %v1295_v15, %v1274_v23  ;;  %v1558_v23 = vld [vmem:[%s2586_s9 + $0x20] sm:$0xff] }
 0x415   : > { %v1298_v22 = vadd.f32 %v1293_v17, %v1273_v26  ;;  %v1555_v17 = vld [vmem:[%s2586_s9 + $0x8] sm:$0xff] }
 0x417   : > { %v1320_v21 = vpop.permute.xlu1 %1319 }
 0x418   : > { %v1318_v25 = vpop.permute.xlu0 %1317  ;;  %v1324_v24 = vadd.f32 %v1320_v21, %v1299_v27  ;;  %v1559_v21 = vld [vmem:[%s2586_s9 + $0x28] sm:$0xff] }
 0x419   : > { %v1323_v30 = vadd.f32 %v1318_v25, %v1298_v22 }
 0x41b   : > { %v1345_v28 = vpop.permute.xlu1 %1344 }
 0x41c   : > { %v1343_v29 = vpop.permute.xlu0 %1342  ;;  %v1349_v31 = vadd.f32 %v1345_v28, %v1324_v24 }
 0x41d   : > { %v1348_v32 = vadd.f32 %v1343_v29, %v1323_v30  ;;  %v1561_v29 = vld [vmem:[%s2586_s9 + $0x38] sm:$0xff]  ;;  %v1560_v30 = vld [vmem:[%s2586_s9 + $0x30] sm:$0xff] }
 0x41f   : > { %v1370_v33 = vpop.permute.xlu1 %1369 }
 0x420   : > { %v1374_v34 = vadd.f32 %v1370_v33, %v1349_v31  ;;  %v1368_v35 = vpop.permute.xlu0 %1367 }
 0x421   : > { %v1373_v36 = vadd.f32 %v1368_v35, %v1348_v32  ;;  %v1563_v35 = vld [vmem:[%s2586_s9 + $0x48] sm:$0xff] }
 0x422   : > { %v1378_v38 = vmul.f32 0.70710677, %v1374_v34  ;;  %v1376_v43 = vmul.f32 0.5, %v1374_v34 }
 0x423   : > { %v1377_v39 = vmul.f32 0.70710677, %v1373_v36  ;;  %v1375_v45 = vmul.f32 0.5, %v1373_v36  ;;  %v1562_v36 = vld [vmem:[%s2586_s9 + $0x40] sm:$0xff] }
 0x424   : > { %2027 = verf.f32 %v1378_v38 }
 0x425   : > { %2029 = verf.f32 %v1377_v39 }
 0x42e   : > { %v2028_v40 = vpop.eup %2027 }
 0x42f   : > { %v2030_v41 = vpop.eup %2029  ;;  %v1382_v44 = vadd.f32 1.0, %v2028_v40 }
 0x430   : > { %v1396_v46 = vpop.permute.xlu1 %1395  ;;  %v1381_v47 = vadd.f32 1.0, %v2030_v41 }
 0x431   : > { %v1384_v48 = vmul.f32 %v1382_v44, %v1376_v43  ;;  %v1391_v49 = vpop.permute.xlu0 %1390  ;;  %v1565_v43 = vld [vmem:[%s2586_s9 + $0x58] sm:$0xff]  ;;  %v1564_v44 = vld [vmem:[%s2586_s9 + $0x50] sm:$0xff] }
 0x432   : > { %v1383_v37 = vmul.f32 %v1381_v47, %v1375_v45 }
 0x433   : > { %v1399_v42 = vmul.f32 %v1396_v46, %v1384_v48 }
 0x434   : > { %v1398_v50 = vmul.f32 %v1391_v49, %v1383_v37  ;;  %v1411_v51 = vpop.permute.xlu1 %1410  ;;  %v1566_v49 = vld [vmem:[%s2586_s9 + $0x60] sm:$0xff] }
 0x435   : > { %v1414_v52 = vadd.f32 %v1411_v51, %v1399_v42  ;;  %v1406_v53 = vpop.permute.xlu0 %1405  ;;  %v1554_v37 = vld [vmem:[%s2586_s9] sm:$0xff] }
 0x436   : > { %v1413_v54 = vadd.f32 %v1406_v53, %v1398_v50  ;;  %v1568_v53 = vld [vmem:[%s2586_s9 + $0x70] sm:$0xff] }
 0x437   : > { %v1416_v55 = vadd.f32 %v1414_v52, %v2360_v0 }
 0x438   : > { %v1415_v56 = vadd.f32 %v1413_v54, %v2362_v1  ;;  %v1431_v60 = vpop.permute.xlu1 %1430  ;;  %v1556_v54 = vld [vmem:[%s2586_s9 + $0x10] sm:$0xff] }
 0x439   : > { %v1426_v63 = vpop.permute.xlu0 %1425 }
 0x43a   : > { %v1992_v57 = vpack.c.bf16 %v1416_v55, %v1415_v56 }
 0x43c   : > { %1993 = vmatprep.subr.bf16.mxu1 %v1992_v57  ;;  %v1535_v1 = vpop.permute.xlu1 %1534 }
 0x43d   : > { %1995 = vmatpush3.bf16.msra.mxu1 %v1992_v57  ;;  %v1530_v58 = vpop.permute.xlu0 %1529 }
 0x440   : > { %1970 = vmatmul.mubr.msk.f32.vlgmr.msra.gmra.mrb[2].mxu1 %vm1009_vm5, %v1905_v59  ;;  %v1550_v14 = vpop.permute.xlu1 %1549 }
 0x441   : > { %v1545_v18 = vpop.permute.xlu0 %1544 }
 0x513   : > { %v1971_v62 = vpop.f32.mrb[2].mxu1 }
 0x514   : > { %v1511_v2 = vadd.f32 %v1971_v62, %v1431_v60  ;;  %v1505_v3 = vpop.f32.mrb[3].mxu1  ;;  %v1567_v60 = vld [vmem:[%s2586_s9 + $0x68] sm:$0xff] }
 0x515   : > { %v1506_v4 = vadd.f32 %v1505_v3, %v1426_v63  ;;  %v1569_v3 = vld [vmem:[%s2586_s9 + $0x78] sm:$0xff] }
 0x516   : > { %v1517_v5 = vmul.f32 0.70710677, %v1511_v2  ;;  %v1515_v8 = vmul.f32 0.5, %v1511_v2 }
 0x517   : > { %v1516_v6 = vmul.f32 0.70710677, %v1506_v4  ;;  %v1514_v10 = vmul.f32 0.5, %v1506_v4 }
 0x518   : > { %2031 = verf.f32 %v1517_v5 }
 0x519   : > { %2033 = verf.f32 %v1516_v6 }
 0x522   : > { %v2032_v0 = vpop.eup %2031 }
 0x523   : > { %v2034_v7 = vpop.eup %2033  ;;  %v1521_v9 = vadd.f32 1.0, %v2032_v0 }
 0x524   : > { %v1520_v11 = vadd.f32 1.0, %v2034_v7 }
 0x525   : > { %v1523_v61 = vmul.f32 %v1521_v9, %v1515_v8  ;;  %v1651_v8 = vlaneseq }
 0x526   : > { %v1522_v12 = vmul.f32 %v1520_v11, %v1514_v10 }
 0x527   : > { %v1538_v13 = vmul.f32 %v1535_v1, %v1523_v61  ;;  %v1652_v11 = vand.u32 127, %v1651_v8 }
 0x528   : > { %v1537_v15 = vmul.f32 %v1530_v58, %v1522_v12 }
 0x529   : > { %v1553_v19 = vadd.f32 %v1550_v14, %v1538_v13  ;;  %v1654_v13 = vshrl.u32 %v1651_v8, 7  ;;  %v1657_v14 = vadd.s32 4294967288, %v1652_v11  ;;  %v1764_v8 = vld [vmem:[%s2590_s13] sm:$0x1] }
 0x52a   : > { %v1552_v20 = vadd.f32 %v1545_v18, %v1537_v15 }
 0x52b   : > { %v1573_v25 = vmul.f32 %v1557_v16, %v1553_v19  ;;  %v1571_v26 = vmul.f32 %v1555_v17, %v1553_v19  ;;  %v1575_v28 = vmul.f32 %v1559_v21, %v1553_v19  ;;  %v1577_v33 = vmul.f32 %v1561_v29, %v1553_v19 }
 0x52c   : > { %v1574_v24 = vmul.f32 %v1558_v23, %v1552_v20  ;;  %v1576_v34 = vmul.f32 %v1560_v30, %v1552_v20  ;;  %v1579_v40 = vmul.f32 %v1563_v35, %v1553_v19  ;;  %v1578_v41 = vmul.f32 %v1562_v36, %v1552_v20 }
 0x52d   : > { %v1596_v27 = vsel %vm1586_vm6, %v1573_v25, 0.0  ;;  %v1590_v22 = vsel %vm1586_vm6, %v1571_v26, 0.0  ;;  %v1602_v31 = vsel %vm1586_vm6, %v1575_v28, 0.0  ;;  %v1608_v38 = vsel %vm1586_vm6, %v1577_v33, 0.0 }
 0x52e   : > { %1597 = vadd.xlane.f32.xlu0 %v1596_v27  ;;  %1591 = vadd.xlane.f32.xlu1 %v1590_v22  ;;  %v1599_v32 = vsel %vm1586_vm6, %v1574_v24, 0.0  ;;  %v1605_v39 = vsel %vm1586_vm6, %v1576_v34, 0.0  ;;  %v1614_v45 = vsel %vm1586_vm6, %v1579_v40, 0.0  ;;  %v1611_v46 = vsel %vm1586_vm6, %v1578_v41, 0.0 }
 0x52f   : > { %v1581_v47 = vmul.f32 %v1565_v43, %v1553_v19  ;;  %v1580_v48 = vmul.f32 %v1564_v44, %v1552_v20  ;;  %v1582_v51 = vmul.f32 %v1566_v49, %v1552_v20  ;;  %v1570_v52 = vmul.f32 %v1554_v37, %v1552_v20 }
 0x530   : > { %v1584_v57 = vmul.f32 %v1568_v53, %v1552_v20  ;;  %v1572_v59 = vmul.f32 %v1556_v54, %v1552_v20  ;;  %v1583_v2 = vmul.f32 %v1567_v60, %v1553_v19  ;;  %v1585_v5 = vmul.f32 %v1569_v3, %v1553_v19 }
 0x531   : > { %v1620_v42 = vsel %vm1586_vm6, %v1581_v47, 0.0  ;;  %v1617_v50 = vsel %vm1586_vm6, %v1580_v48, 0.0  ;;  %v1623_v55 = vsel %vm1586_vm6, %v1582_v51, 0.0  ;;  %v1587_v56 = vsel %vm1586_vm6, %v1570_v52, 0.0 }
 0x532   : > { %1603 = vadd.xlane.f32.xlu0 %v1602_v31  ;;  %1600 = vadd.xlane.f32.xlu1 %v1599_v32  ;;  %v1629_v62 = vsel %vm1586_vm6, %v1584_v57, 0.0  ;;  %v1593_v63 = vsel %vm1586_vm6, %v1572_v59, 0.0  ;;  %v1626_v4 = vsel %vm1586_vm6, %v1583_v2, 0.0  ;;  %v1632_v6 = vsel %vm1586_vm6, %v1585_v5, 0.0  ;;  %v1745_v57 = vld [vmem:[%s2587_s10] sm:$0xff] }
 0x533   : > { %v1660_v17 = vsub.s32 %v1657_v14, %v1654_v13  ;;  %v1655_v18 = vsub.s32 %v1652_v11, %v1654_v13 }
 0x536   : > { %1609 = vadd.xlane.f32.xlu0 %v1608_v38  ;;  %1606 = vadd.xlane.f32.xlu1 %v1605_v39 }
 0x53a   : > { %1615 = vadd.xlane.f32.xlu0 %v1614_v45  ;;  %1612 = vadd.xlane.f32.xlu1 %v1611_v46 }
 0x53e   : > { %1621 = vadd.xlane.f32.xlu0 %v1620_v42  ;;  %1618 = vadd.xlane.f32.xlu1 %v1617_v50 }
 0x542   : > { %1624 = vadd.xlane.f32.xlu1 %v1623_v55  ;;  %1588 = vadd.xlane.f32.xlu0 %v1587_v56 }
 0x546   : > { %1630 = vadd.xlane.f32.xlu1 %v1629_v62  ;;  %1594 = vadd.xlane.f32.xlu0 %v1593_v63  ;;  %v1747_v62 = vld [vmem:[%s2588_s11] sm:$0xff] }
 0x54a   : > { %1627 = vadd.xlane.f32.xlu0 %v1626_v4 }
 0x54e   : > { %1633 = vadd.xlane.f32.xlu0 %v1632_v6 }
 0x5bb   : > { %v1592_v0 = vpop.xlane.xlu1 %1591  ;;  %v1598_v1 = vpop.xlane.xlu0 %1597 }
 0x5bc   : > { %v1661_v21 = vrot.slane %v1592_v0, %v1660_v17  ;;  %v1671_v22 = vrot.slane %v1598_v1, %v1660_v17 }
 0x5bf   : > { %v1601_v7 = vpop.xlane.xlu1 %1600  ;;  %v1604_v58 = vpop.xlane.xlu0 %1603 }
 0x5c0   : > { %v1676_v23 = vrot.slane %v1601_v7, %v1655_v18  ;;  %v1680_v25 = vrot.slane %v1604_v58, %v1660_v17  ;;  %v1762_v7 = vld [vmem:[%s2589_s12] sm:$0x1] }
 0x5c2   : > { %v1681_v36 = vsel %vm1662_vm7, %v1680_v25, %v1676_v23 }
 0x5c3   : > { %v1607_v9 = vpop.xlane.xlu1 %1606  ;;  %v1610_v10 = vpop.xlane.xlu0 %1609 }
 0x5c4   : > { %v1685_v28 = vrot.slane %v1607_v9, %v1655_v18  ;;  %v1689_v24 = vrot.slane %v1610_v10, %v1660_v17 }
 0x5c6   : > { %v1690_v40 = vsel %vm1662_vm7, %v1689_v24, %v1685_v28 }
 0x5c7   : > { %v1613_v61 = vpop.xlane.xlu1 %1612  ;;  %v1616_v12 = vpop.xlane.xlu0 %1615 }
 0x5c8   : > { %v1694_v30 = vrot.slane %v1613_v61, %v1655_v18  ;;  %v1698_v31 = vrot.slane %v1616_v12, %v1660_v17  ;;  %v1770_v61 = vld [vmem:[#allocation3] sm:$0x1] }
 0x5ca   : > { %v1699_v44 = vsel %vm1662_vm7, %v1698_v31, %v1694_v30 }
 0x5cb   : > { %v1622_v15 = vpop.xlane.xlu0 %1621  ;;  %v1619_v16 = vpop.xlane.xlu1 %1618 }
 0x5cc   : > { %v1703_v32 = vrot.slane %v1619_v16, %v1655_v18  ;;  %v1707_v33 = vrot.slane %v1622_v15, %v1660_v17 }
 0x5ce   : > { %v1708_v48 = vsel %vm1662_vm7, %v1707_v33, %v1703_v32 }
 0x5cf   : > { %v1589_v19 = vpop.xlane.xlu0 %1588  ;;  %v1625_v26 = vpop.xlane.xlu1 %1624 }
 0x5d0   : > { %v1656_v20 = vrot.slane %v1589_v19, %v1655_v18  ;;  %v1712_v45 = vrot.slane %v1625_v26, %v1655_v18 }
 0x5d2   : > { %v1663_v34 = vsel %vm1662_vm7, %v1661_v21, %v1656_v20 }
 0x5d3   : > { %v1595_v27 = vpop.xlane.xlu0 %1594  ;;  %v1631_v46 = vpop.xlane.xlu1 %1630 }
 0x5d4   : > { %v1667_v29 = vrot.slane %v1595_v27, %v1655_v18  ;;  %v1721_v51 = vrot.slane %v1631_v46, %v1655_v18 }
 0x5d6   : > { %v1672_v35 = vsel %vm1662_vm7, %v1671_v22, %v1667_v29 }
 0x5d7   : > { %v1728_v38 = vsel %vm1727_vm8, %v1672_v35, %v1663_v34  ;;  %v1628_v39 = vpop.xlane.xlu0 %1627 }
 0x5d8   : > { %v1730_v41 = vsel %vm1729_vm9, %v1681_v36, %v1728_v38  ;;  %v1716_v43 = vrot.slane %v1628_v39, %v1660_v17 }
 0x5d9   : > { %v1732_v47 = vsel %vm1731_vm10, %v1690_v40, %v1730_v41 }
 0x5da   : > { %v1734_v49 = vsel %vm1733_vm11, %v1699_v44, %v1732_v47  ;;  %v1717_v37 = vsel %vm1662_vm7, %v1716_v43, %v1712_v45 }
 0x5db   : > { %v1634_v42 = vpop.xlane.xlu0 %1633  ;;  %v1736_v50 = vsel %vm1735_vm12, %v1708_v48, %v1734_v49 }
 0x5dc   : > { %v1725_v52 = vrot.slane %v1634_v42, %v1660_v17  ;;  %v1738_v54 = vsel %vm1737_vm13, %v1717_v37, %v1736_v50 }
 0x5de   : > { %v1726_v53 = vsel %vm1662_vm7, %v1725_v52, %v1721_v51 }
 0x5df   : > { %v1740_v55 = vsel %vm1739_vm14, %v1726_v53, %v1738_v54 }
 0x5e0   : > { %v1742_v56 = vsel %vm1009_vm5, %v1740_v55, 0.0 }
 0x5e1   : > { %1743 = vadd.xlane.f32.xlu1 %v1742_v56 }
 0x66e   : > { %v1744_v59 = vpop.xlane.xlu1 %1743 }
 0x66f   : > { %v1746_v60 = vadd.f32 %v1745_v57, %v1744_v59 }
 0x671   : > { %1750 = vperm.xlu0 %2017, %v1746_v60  }
 0x6f0   : > { %v1751_v63 = vpop.permute.xlu0 %1750 }
 0x6f1   : > { %v1753_v2 = vmul.f32 %v1751_v63, %v1747_v62 }
 0x6f3   : > { %v1755_v3 = vsel %vm1754_vm15, %v1753_v2, 0.0 }
 0x6f4   : > { %v1756_v4 = vrot.slane %v1755_v3, 4 }
 0x6f6   : > { %v1757_v5 = vadd.f32 %v1756_v4, %v1755_v3 }
 0x6f8   : > { %v1758_v6 = vrot.slane %v1757_v5, 2 }
 0x6fa   : > { %v1759_v0 = vadd.f32 %v1758_v6, %v1757_v5 }
 0x6fc   : > { %v1760_v1 = vrot.slane %v1759_v0, 1 }
 0x6fe   : > { %v1761_v58 = vadd.f32 %v1760_v1, %v1759_v0 }
 0x700   : > { %v1763_v9 = vadd.f32 %v1762_v7, %v1761_v58 }
 0x702   : > { %v1765_v10 = vmul.f32 %v1764_v8, %v1763_v9 }
 0x704   : > { %v1767_v11 = vsel %vm1766_vm0, %v1765_v10, 0.0 }
 0x705   : > { %1768 = vadd.xlane.f32.xlu1 %v1767_v11 }
 0x792   : > { %v1769_v12 = vpop.xlane.xlu1 %1768 }
 0x793   : > { %v1771_v13 = vadd.f32 %v1770_v61, %v1769_v12 }
 0x795   : > { %1773 = vst.msk [vmem:[%s512_s23] sm:$0x1] %vm1772_vm1, %v1771_v13 }
 0x796 PF: > { %s27_s20 = sadd.s32 1, %s2041_s20  }
 0x797   : > { %p24_p4 = scmp.ge.s32.totalorder %s27_s20, 4  }
 0x799   :  { %26 = sbr.rel (!%p24_p4) target bundleno = 3 (0x3), region = 142 }

</bundles_post_ra>
